<compile_context>
chip_gen: v7x
topology: tpu7x:2x2x1
jax: 0.10.0
libtpu: 0.0.40
codegen_flags: <defaults>
</compile_context>

<pallas_src>
import functools
import math

import numpy as np
import jax
import jax.numpy as jnp
from jax.experimental import pallas as pl
from jax.experimental.pallas import tpu as pltpu  # noqa: F401  (TPU backend)

# ---- model config (small, consistent with the module's __init__ shapes) ----
N_EMBD = 32          # config.n_embd
N_HEAD = 4           # config.n_head
HEAD_DIM = N_EMBD // N_HEAD
SEQ = 8
BATCH = 2
EPS = 1e-5           # nn.LayerNorm default eps
NEG_BIG = -1e30      # large finite negative (safe: every row attends to self)


def _layernorm(x, g, b):
    mu = jnp.mean(x, axis=-1, keepdims=True)
    var = jnp.mean((x - mu) ** 2, axis=-1, keepdims=True)
    return (x - mu) * jax.lax.rsqrt(var + EPS) * g + b


def _gelu_tanh(x):
    # nn.GELU(approximate='tanh')
    c = math.sqrt(2.0 / math.pi)
    return 0.5 * x * (1.0 + jnp.tanh(c * (x + 0.044715 * x * x * x)))


def block_kernel(x_ref, mask_ref,
                 ln1_g_ref, ln1_b_ref,
                 wq_ref, bq_ref, wk_ref, bk_ref,
                 wvp_ref, bvp_ref, bproj_a_ref,
                 ln2_g_ref, ln2_b_ref,
                 wfc_ref, bfc_ref, wpm_ref, bpm_ref,
                 o_ref, *, n_head):
    x = x_ref[...]                                # (B*T, C) whole batch, f32
    mask_add = mask_ref[...]                      # (B*T, B*T) static 0/-1e30

    # ---------------- attention branch: x + attn(ln_1(x)) ----------------
    h = _layernorm(x, ln1_g_ref[...], ln1_b_ref[...])
    k = jnp.dot(h, wk_ref[...], preferred_element_type=jnp.float32) + bk_ref[...]

    att = jnp.zeros_like(x)
    for hh in range(n_head):                      # static unroll (n_head = 4)
        # W_q[hh] has non-head columns zeroed and the 1/sqrt(hd) scale folded
        # in, so contracting over the full C lanes gives the per-head score
        # with zero lane slicing.
        qh = jnp.dot(h, wq_ref[hh], preferred_element_type=jnp.float32) + bq_ref[hh]
        # V and the output projection are fused per head in the wrapper.
        vp = jnp.dot(h, wvp_ref[hh], preferred_element_type=jnp.float32) + bvp_ref[hh]
        # MXU-native orientation: contract the feature dims, no K transpose.
        s = jax.lax.dot_general(qh, k, (((1,), (1,)), ((), ())),
                                preferred_element_type=jnp.float32)
        s = s + mask_add
        s = s - jnp.max(s, axis=-1, keepdims=True)
        p = jnp.exp(s)
        p = p * pl.reciprocal(jnp.sum(p, axis=-1, keepdims=True), approx=True)
        att = att + jnp.dot(p, vp, preferred_element_type=jnp.float32)
    x = x + att + bproj_a_ref[...]

    # ---------------- MLP branch: x + mlp(ln_2(x)) ----------------
    h2 = _layernorm(x, ln2_g_ref[...], ln2_b_ref[...])
    h2 = jnp.dot(h2, wfc_ref[...], preferred_element_type=jnp.float32) + bfc_ref[...]
    h2 = _gelu_tanh(h2)                           # (B*T, 4C)
    h2 = jnp.dot(h2, wpm_ref[...], preferred_element_type=jnp.float32) + bpm_ref[...]

    o_ref[...] = (x + h2).astype(o_ref.dtype)     # direct (B*T, C) store


def _prepare_kernel_params(params, n_head=N_HEAD):
    """Re-layout the module weights for a lane-shuffle-free kernel (pure JAX)."""
    (ln1_g, ln1_b, w_attn, b_attn, w_proj_a, b_proj_a,
     ln2_g, ln2_b, w_fc, b_fc, w_proj_m, b_proj_m) = params
    C = ln1_g.shape[-1]
    hd = C // n_head
    scale = 1.0 / math.sqrt(hd)

    w_q, w_k, w_v = w_attn[:, :C], w_attn[:, C:2 * C], w_attn[:, 2 * C:]
    b_q, b_k, b_v = b_attn[:, :C], b_attn[:, C:2 * C], b_attn[:, 2 * C:]

    wq_h, bq_h, wvp_h, bvp_h = [], [], [], []
    for hh in range(n_head):
        sl = slice(hh * hd, (hh + 1) * hd)
        col_mask = np.zeros((1, C), np.float32)
        col_mask[0, sl] = 1.0
        col_mask = jnp.asarray(col_mask)
        wq_h.append(w_q * scale * col_mask)           # (C, C), non-head cols 0
        bq_h.append(b_q * scale * col_mask)           # (1, C)
        wvp_h.append(w_v[:, sl] @ w_proj_a[sl, :])    # (C, C) fused V·proj
        bvp_h.append(b_v[:, sl] @ w_proj_a[sl, :])    # (1, C)

    return [ln1_g, ln1_b,
            jnp.stack(wq_h), jnp.stack(bq_h),         # (H, C, C), (H, 1, C)
            w_k, b_k,
            jnp.stack(wvp_h), jnp.stack(bvp_h),       # (H, C, C), (H, 1, C)
            b_proj_a,
            ln2_g, ln2_b, w_fc, b_fc, w_proj_m, b_proj_m]


def _block_diag_causal_mask(batch, seq):
    """Additive mask: 0 where token j is a non-future token of the same
    sequence as token i, else -1e30.  Static numpy constant."""
    bt = batch * seq
    idx = np.arange(bt)
    same_seq = (idx[:, None] // seq) == (idx[None, :] // seq)
    causal = idx[:, None] >= idx[None, :]
    return jnp.asarray(np.where(same_seq & causal, 0.0, NEG_BIG).astype(np.float32))


def block_forward(x, params):
    B, T, C = x.shape
    bt = B * T
    x2d = x.reshape(bt, C)
    mask_add = _block_diag_causal_mask(B, T)
    kparams = _prepare_kernel_params(params)

    kernel = functools.partial(block_kernel, n_head=N_HEAD)

    # Single-step kernel (no grid): whole-array refs live in VMEM once, no
    # double-buffering.  At real GPT-2 sizes this becomes a ("parallel",)
    # row-tiled grid (v7x has 2 TCs) with a flash-attention KV loop, K-tiled
    # MLP accumulator and bf16 MXU operands, sized against 64 MiB VMEM.
    out2d = pl.pallas_call(
        kernel,
        out_shape=jax.ShapeDtypeStruct((bt, C), x.dtype),
    )(x2d, mask_add, *kparams)

    return out2d.reshape(B, T, C)


def init_params(key, C=N_EMBD):
    ks = jax.random.split(key, 5)
    std = 0.02
    ln1_g = jnp.ones((1, C), jnp.float32)
    ln1_b = jnp.zeros((1, C), jnp.float32)
    # weights stored as (in, out) so the math is x @ W + b
    w_attn = std * jax.random.normal(ks[0], (C, 3 * C), jnp.float32)
    b_attn = jnp.zeros((1, 3 * C), jnp.float32)
    w_proj_a = std * jax.random.normal(ks[1], (C, C), jnp.float32)
    b_proj_a = jnp.zeros((1, C), jnp.float32)
    ln2_g = jnp.ones((1, C), jnp.float32)
    ln2_b = jnp.zeros((1, C), jnp.float32)
    w_fc = std * jax.random.normal(ks[2], (C, 4 * C), jnp.float32)
    b_fc = jnp.zeros((1, 4 * C), jnp.float32)
    w_proj_m = std * jax.random.normal(ks[3], (4 * C, C), jnp.float32)
    b_proj_m = jnp.zeros((1, C), jnp.float32)
    return [ln1_g, ln1_b, w_attn, b_attn, w_proj_a, b_proj_a,
            ln2_g, ln2_b, w_fc, b_fc, w_proj_m, b_proj_m]


def block_reference(x, params):
    """Pure-JAX reference of the same Block forward, for a correctness check."""
    (ln1_g, ln1_b, w_attn, b_attn, w_proj_a, b_proj_a,
     ln2_g, ln2_b, w_fc, b_fc, w_proj_m, b_proj_m) = params
    B, T, C = x.shape

    def ln(v, g, b):
        mu = jnp.mean(v, -1, keepdims=True)
        var = jnp.mean((v - mu) ** 2, -1, keepdims=True)
        return (v - mu) * jax.lax.rsqrt(var + EPS) * g + b

    h = ln(x, ln1_g, ln1_b)
    qkv = h @ w_attn + b_attn
    q, k, v = jnp.split(qkv, 3, axis=-1)
    q = q.reshape(B, T, N_HEAD, HEAD_DIM).transpose(0, 2, 1, 3)
    k = k.reshape(B, T, N_HEAD, HEAD_DIM).transpose(0, 2, 1, 3)
    v = v.reshape(B, T, N_HEAD, HEAD_DIM).transpose(0, 2, 1, 3)
    scores = jnp.einsum('bhqd,bhkd->bhqk', q, k) / math.sqrt(HEAD_DIM)
    mask = jnp.tril(jnp.ones((T, T), bool))
    scores = jnp.where(mask, scores, -jnp.inf)
    p = jax.nn.softmax(scores, axis=-1)
    att = jnp.einsum('bhqk,bhkd->bhqd', p, v).transpose(0, 2, 1, 3).reshape(B, T, C)
    x = x + att @ w_proj_a + b_proj_a

    h2 = ln(x, ln2_g, ln2_b)
    h2 = h2 @ w_fc + b_fc
    c = math.sqrt(2.0 / math.pi)
    h2 = 0.5 * h2 * (1.0 + jnp.tanh(c * (h2 + 0.044715 * h2 ** 3)))
    x = x + h2 @ w_proj_m + b_proj_m
    return x


if __name__ == "__main__":
    key = jax.random.PRNGKey(0)
    kx, kp = jax.random.split(key)
    x = jax.random.normal(kx, (BATCH, SEQ, N_EMBD), jnp.float32)
    params = init_params(kp)

    out = jax.block_until_ready(block_forward(x, params))

    ref = block_reference(x, params)
    err = jnp.max(jnp.abs(out - ref))
    # Slightly loosened tolerance: softmax denominator uses the EUP
    # approximate reciprocal (per perf review); a real bug is orders of
    # magnitude larger than this.
    assert jnp.allclose(out, ref, atol=2e-3, rtol=2e-3), f"max err {err}"
    print("KERNEL_OK")
</pallas_src>

<mosaic_0001>
module attributes {stable_mosaic.version = 11 : i64} {
  func.func @block_kernel(%arg0: memref<16x32xf32, #tpu.memory_space<vmem>>, %arg1: memref<16x16xf32, #tpu.memory_space<vmem>>, %arg2: memref<1x32xf32, #tpu.memory_space<vmem>>, %arg3: memref<1x32xf32, #tpu.memory_space<vmem>>, %arg4: memref<4x32x32xf32, #tpu.memory_space<vmem>>, %arg5: memref<4x1x32xf32, #tpu.memory_space<vmem>>, %arg6: memref<32x32xf32, #tpu.memory_space<vmem>>, %arg7: memref<1x32xf32, #tpu.memory_space<vmem>>, %arg8: memref<4x32x32xf32, #tpu.memory_space<vmem>>, %arg9: memref<4x1x32xf32, #tpu.memory_space<vmem>>, %arg10: memref<1x32xf32, #tpu.memory_space<vmem>>, %arg11: memref<1x32xf32, #tpu.memory_space<vmem>>, %arg12: memref<1x32xf32, #tpu.memory_space<vmem>>, %arg13: memref<32x128xf32, #tpu.memory_space<vmem>>, %arg14: memref<1x128xf32, #tpu.memory_space<vmem>>, %arg15: memref<128x32xf32, #tpu.memory_space<vmem>>, %arg16: memref<1x32xf32, #tpu.memory_space<vmem>>, %arg17: memref<16x32xf32, #tpu.memory_space<vmem>>) attributes {dimension_semantics = [], scalar_prefetch = 0 : i64, scratch_operands = 0 : i64, tpu.core_type = #tpu.core_type<tc>} {
    %c0 = arith.constant 0 : index
    %c0_0 = arith.constant 0 : index
    %0 = vector.load %arg0[%c0, %c0_0] : memref<16x32xf32, #tpu.memory_space<vmem>>, vector<16x32xf32>
    %c0_1 = arith.constant 0 : index
    %c0_2 = arith.constant 0 : index
    %1 = vector.load %arg1[%c0_1, %c0_2] : memref<16x16xf32, #tpu.memory_space<vmem>>, vector<16x16xf32>
    %c0_3 = arith.constant 0 : index
    %c0_4 = arith.constant 0 : index
    %2 = vector.load %arg2[%c0_3, %c0_4] : memref<1x32xf32, #tpu.memory_space<vmem>>, vector<1x32xf32>
    %c0_5 = arith.constant 0 : index
    %c0_6 = arith.constant 0 : index
    %3 = vector.load %arg3[%c0_5, %c0_6] : memref<1x32xf32, #tpu.memory_space<vmem>>, vector<1x32xf32>
    %cst = arith.constant dense<0.000000e+00> : vector<16xf32>
    %4 = vector.multi_reduction <add>, %0, %cst [1] : vector<16x32xf32> to vector<16xf32>
    %5 = vector.shape_cast %4 : vector<16xf32> to vector<16x1xf32>
    %cst_7 = arith.constant 3.200000e+01 : f32
    %6 = vector.broadcast %cst_7 : f32 to vector<16x1xf32>
    %7 = arith.divf %5, %6 : vector<16x1xf32>
    %8 = vector.broadcast %7 : vector<16x1xf32> to vector<16x32xf32>
    %9 = arith.subf %0, %8 : vector<16x32xf32>
    %10 = arith.mulf %9, %9 : vector<16x32xf32>
    %cst_8 = arith.constant dense<0.000000e+00> : vector<16xf32>
    %11 = vector.multi_reduction <add>, %10, %cst_8 [1] : vector<16x32xf32> to vector<16xf32>
    %12 = vector.shape_cast %11 : vector<16xf32> to vector<16x1xf32>
    %cst_9 = arith.constant 3.200000e+01 : f32
    %13 = vector.broadcast %cst_9 : f32 to vector<16x1xf32>
    %14 = arith.divf %12, %13 : vector<16x1xf32>
    %15 = vector.broadcast %7 : vector<16x1xf32> to vector<16x32xf32>
    %16 = arith.subf %0, %15 : vector<16x32xf32>
    %cst_10 = arith.constant 9.99999974E-6 : f32
    %17 = vector.broadcast %cst_10 : f32 to vector<16x1xf32>
    %18 = arith.addf %14, %17 : vector<16x1xf32>
    %19 = math.rsqrt %18 : vector<16x1xf32>
    %20 = vector.broadcast %19 : vector<16x1xf32> to vector<16x32xf32>
    %21 = arith.mulf %16, %20 : vector<16x32xf32>
    %22 = vector.broadcast %2 : vector<1x32xf32> to vector<16x32xf32>
    %23 = arith.mulf %21, %22 : vector<16x32xf32>
    %24 = vector.broadcast %3 : vector<1x32xf32> to vector<16x32xf32>
    %25 = arith.addf %23, %24 : vector<16x32xf32>
    %c0_11 = arith.constant 0 : index
    %c0_12 = arith.constant 0 : index
    %26 = vector.load %arg6[%c0_11, %c0_12] : memref<32x32xf32, #tpu.memory_space<vmem>>, vector<32x32xf32>
    %cst_13 = arith.constant dense<0.000000e+00> : vector<16x32xf32>
    %27 = tpu.matmul %25, %26, %cst_13 {dimension_numbers = #tpu.dot_dimension_numbers<[1], [0], [0], [1], [0, 0, 1, 1], [], []>} : vector<16x32xf32>, vector<32x32xf32>, vector<16x32xf32> -> vector<16x32xf32>
    %c0_14 = arith.constant 0 : index
    %c0_15 = arith.constant 0 : index
    %28 = vector.load %arg7[%c0_14, %c0_15] : memref<1x32xf32, #tpu.memory_space<vmem>>, vector<1x32xf32>
    %29 = vector.broadcast %28 : vector<1x32xf32> to vector<16x32xf32>
    %30 = arith.addf %27, %29 : vector<16x32xf32>
    %cst_16 = arith.constant 0.000000e+00 : f32
    %31 = vector.broadcast %cst_16 : f32 to vector<16x32xf32>
    %c0_17 = arith.constant 0 : index
    %c0_18 = arith.constant 0 : index
    %c0_19 = arith.constant 0 : index
    %32 = vector.load %arg4[%c0_17, %c0_18, %c0_19] : memref<4x32x32xf32, #tpu.memory_space<vmem>>, vector<1x32x32xf32>
    %33 = vector.shape_cast %32 : vector<1x32x32xf32> to vector<32x32xf32>
    %cst_20 = arith.constant dense<0.000000e+00> : vector<16x32xf32>
    %34 = tpu.matmul %25, %33, %cst_20 {dimension_numbers = #tpu.dot_dimension_numbers<[1], [0], [0], [1], [0, 0, 1, 1], [], []>} : vector<16x32xf32>, vector<32x32xf32>, vector<16x32xf32> -> vector<16x32xf32>
    %c0_21 = arith.constant 0 : index
    %c0_22 = arith.constant 0 : index
    %c0_23 = arith.constant 0 : index
    %35 = vector.load %arg5[%c0_21, %c0_22, %c0_23] : memref<4x1x32xf32, #tpu.memory_space<vmem>>, vector<1x1x32xf32>
    %36 = vector.shape_cast %35 : vector<1x1x32xf32> to vector<1x32xf32>
    %37 = vector.broadcast %36 : vector<1x32xf32> to vector<16x32xf32>
    %38 = arith.addf %34, %37 : vector<16x32xf32>
    %c0_24 = arith.constant 0 : index
    %c0_25 = arith.constant 0 : index
    %c0_26 = arith.constant 0 : index
    %39 = vector.load %arg8[%c0_24, %c0_25, %c0_26] : memref<4x32x32xf32, #tpu.memory_space<vmem>>, vector<1x32x32xf32>
    %40 = vector.shape_cast %39 : vector<1x32x32xf32> to vector<32x32xf32>
    %cst_27 = arith.constant dense<0.000000e+00> : vector<16x32xf32>
    %41 = tpu.matmul %25, %40, %cst_27 {dimension_numbers = #tpu.dot_dimension_numbers<[1], [0], [0], [1], [0, 0, 1, 1], [], []>} : vector<16x32xf32>, vector<32x32xf32>, vector<16x32xf32> -> vector<16x32xf32>
    %c0_28 = arith.constant 0 : index
    %c0_29 = arith.constant 0 : index
    %c0_30 = arith.constant 0 : index
    %42 = vector.load %arg9[%c0_28, %c0_29, %c0_30] : memref<4x1x32xf32, #tpu.memory_space<vmem>>, vector<1x1x32xf32>
    %43 = vector.shape_cast %42 : vector<1x1x32xf32> to vector<1x32xf32>
    %44 = vector.broadcast %43 : vector<1x32xf32> to vector<16x32xf32>
    %45 = arith.addf %41, %44 : vector<16x32xf32>
    %cst_31 = arith.constant dense<0.000000e+00> : vector<16x16xf32>
    %46 = tpu.matmul %38, %30, %cst_31 {dimension_numbers = #tpu.dot_dimension_numbers<[1], [1], [0], [0], [0, 0, 1, 0], [], []>} : vector<16x32xf32>, vector<16x32xf32>, vector<16x16xf32> -> vector<16x16xf32>
    %47 = arith.addf %46, %1 : vector<16x16xf32>
    %cst_32 = arith.constant dense<0xFF800000> : vector<16xf32>
    %48 = vector.multi_reduction <maximumf>, %47, %cst_32 [1] : vector<16x16xf32> to vector<16xf32>
    %49 = vector.shape_cast %48 : vector<16xf32> to vector<16x1xf32>
    %50 = vector.broadcast %49 : vector<16x1xf32> to vector<16x16xf32>
    %51 = arith.subf %47, %50 : vector<16x16xf32>
    %52 = math.exp %51 : vector<16x16xf32>
    %cst_33 = arith.constant dense<0.000000e+00> : vector<16xf32>
    %53 = vector.multi_reduction <add>, %52, %cst_33 [1] : vector<16x16xf32> to vector<16xf32>
    %54 = vector.shape_cast %53 : vector<16xf32> to vector<16x1xf32>
    %55 = tpu.reciprocal %54 {approx = true} : vector<16x1xf32> -> vector<16x1xf32>
    %56 = vector.broadcast %55 : vector<16x1xf32> to vector<16x16xf32>
    %57 = arith.mulf %52, %56 : vector<16x16xf32>
    %cst_34 = arith.constant dense<0.000000e+00> : vector<16x32xf32>
    %58 = tpu.matmul %57, %45, %cst_34 {dimension_numbers = #tpu.dot_dimension_numbers<[1], [0], [0], [1], [0, 0, 1, 1], [], []>} : vector<16x16xf32>, vector<16x32xf32>, vector<16x32xf32> -> vector<16x32xf32>
    %59 = arith.addf %31, %58 : vector<16x32xf32>
    %c1 = arith.constant 1 : index
    %c0_35 = arith.constant 0 : index
    %c0_36 = arith.constant 0 : index
    %60 = vector.load %arg4[%c1, %c0_35, %c0_36] : memref<4x32x32xf32, #tpu.memory_space<vmem>>, vector<1x32x32xf32>
    %61 = vector.shape_cast %60 : vector<1x32x32xf32> to vector<32x32xf32>
    %cst_37 = arith.constant dense<0.000000e+00> : vector<16x32xf32>
    %62 = tpu.matmul %25, %61, %cst_37 {dimension_numbers = #tpu.dot_dimension_numbers<[1], [0], [0], [1], [0, 0, 1, 1], [], []>} : vector<16x32xf32>, vector<32x32xf32>, vector<16x32xf32> -> vector<16x32xf32>
    %c1_38 = arith.constant 1 : index
    %c0_39 = arith.constant 0 : index
    %c0_40 = arith.constant 0 : index
    %63 = vector.load %arg5[%c1_38, %c0_39, %c0_40] : memref<4x1x32xf32, #tpu.memory_space<vmem>>, vector<1x1x32xf32>
    %64 = vector.shape_cast %63 : vector<1x1x32xf32> to vector<1x32xf32>
    %65 = vector.broadcast %64 : vector<1x32xf32> to vector<16x32xf32>
    %66 = arith.addf %62, %65 : vector<16x32xf32>
    %c1_41 = arith.constant 1 : index
    %c0_42 = arith.constant 0 : index
    %c0_43 = arith.constant 0 : index
    %67 = vector.load %arg8[%c1_41, %c0_42, %c0_43] : memref<4x32x32xf32, #tpu.memory_space<vmem>>, vector<1x32x32xf32>
    %68 = vector.shape_cast %67 : vector<1x32x32xf32> to vector<32x32xf32>
    %cst_44 = arith.constant dense<0.000000e+00> : vector<16x32xf32>
    %69 = tpu.matmul %25, %68, %cst_44 {dimension_numbers = #tpu.dot_dimension_numbers<[1], [0], [0], [1], [0, 0, 1, 1], [], []>} : vector<16x32xf32>, vector<32x32xf32>, vector<16x32xf32> -> vector<16x32xf32>
    %c1_45 = arith.constant 1 : index
    %c0_46 = arith.constant 0 : index
    %c0_47 = arith.constant 0 : index
    %70 = vector.load %arg9[%c1_45, %c0_46, %c0_47] : memref<4x1x32xf32, #tpu.memory_space<vmem>>, vector<1x1x32xf32>
    %71 = vector.shape_cast %70 : vector<1x1x32xf32> to vector<1x32xf32>
    %72 = vector.broadcast %71 : vector<1x32xf32> to vector<16x32xf32>
    %73 = arith.addf %69, %72 : vector<16x32xf32>
    %cst_48 = arith.constant dense<0.000000e+00> : vector<16x16xf32>
    %74 = tpu.matmul %66, %30, %cst_48 {dimension_numbers = #tpu.dot_dimension_numbers<[1], [1], [0], [0], [0, 0, 1, 0], [], []>} : vector<16x32xf32>, vector<16x32xf32>, vector<16x16xf32> -> vector<16x16xf32>
    %75 = arith.addf %74, %1 : vector<16x16xf32>
    %cst_49 = arith.constant dense<0xFF800000> : vector<16xf32>
    %76 = vector.multi_reduction <maximumf>, %75, %cst_49 [1] : vector<16x16xf32> to vector<16xf32>
    %77 = vector.shape_cast %76 : vector<16xf32> to vector<16x1xf32>
    %78 = vector.broadcast %77 : vector<16x1xf32> to vector<16x16xf32>
    %79 = arith.subf %75, %78 : vector<16x16xf32>
    %80 = math.exp %79 : vector<16x16xf32>
    %cst_50 = arith.constant dense<0.000000e+00> : vector<16xf32>
    %81 = vector.multi_reduction <add>, %80, %cst_50 [1] : vector<16x16xf32> to vector<16xf32>
    %82 = vector.shape_cast %81 : vector<16xf32> to vector<16x1xf32>
    %83 = tpu.reciprocal %82 {approx = true} : vector<16x1xf32> -> vector<16x1xf32>
    %84 = vector.broadcast %83 : vector<16x1xf32> to vector<16x16xf32>
    %85 = arith.mulf %80, %84 : vector<16x16xf32>
    %cst_51 = arith.constant dense<0.000000e+00> : vector<16x32xf32>
    %86 = tpu.matmul %85, %73, %cst_51 {dimension_numbers = #tpu.dot_dimension_numbers<[1], [0], [0], [1], [0, 0, 1, 1], [], []>} : vector<16x16xf32>, vector<16x32xf32>, vector<16x32xf32> -> vector<16x32xf32>
    %87 = arith.addf %59, %86 : vector<16x32xf32>
    %c2 = arith.constant 2 : index
    %c0_52 = arith.constant 0 : index
    %c0_53 = arith.constant 0 : index
    %88 = vector.load %arg4[%c2, %c0_52, %c0_53] : memref<4x32x32xf32, #tpu.memory_space<vmem>>, vector<1x32x32xf32>
    %89 = vector.shape_cast %88 : vector<1x32x32xf32> to vector<32x32xf32>
    %cst_54 = arith.constant dense<0.000000e+00> : vector<16x32xf32>
    %90 = tpu.matmul %25, %89, %cst_54 {dimension_numbers = #tpu.dot_dimension_numbers<[1], [0], [0], [1], [0, 0, 1, 1], [], []>} : vector<16x32xf32>, vector<32x32xf32>, vector<16x32xf32> -> vector<16x32xf32>
    %c2_55 = arith.constant 2 : index
    %c0_56 = arith.constant 0 : index
    %c0_57 = arith.constant 0 : index
    %91 = vector.load %arg5[%c2_55, %c0_56, %c0_57] : memref<4x1x32xf32, #tpu.memory_space<vmem>>, vector<1x1x32xf32>
    %92 = vector.shape_cast %91 : vector<1x1x32xf32> to vector<1x32xf32>
    %93 = vector.broadcast %92 : vector<1x32xf32> to vector<16x32xf32>
    %94 = arith.addf %90, %93 : vector<16x32xf32>
    %c2_58 = arith.constant 2 : index
    %c0_59 = arith.constant 0 : index
    %c0_60 = arith.constant 0 : index
    %95 = vector.load %arg8[%c2_58, %c0_59, %c0_60] : memref<4x32x32xf32, #tpu.memory_space<vmem>>, vector<1x32x32xf32>
    %96 = vector.shape_cast %95 : vector<1x32x32xf32> to vector<32x32xf32>
    %cst_61 = arith.constant dense<0.000000e+00> : vector<16x32xf32>
    %97 = tpu.matmul %25, %96, %cst_61 {dimension_numbers = #tpu.dot_dimension_numbers<[1], [0], [0], [1], [0, 0, 1, 1], [], []>} : vector<16x32xf32>, vector<32x32xf32>, vector<16x32xf32> -> vector<16x32xf32>
    %c2_62 = arith.constant 2 : index
    %c0_63 = arith.constant 0 : index
    %c0_64 = arith.constant 0 : index
    %98 = vector.load %arg9[%c2_62, %c0_63, %c0_64] : memref<4x1x32xf32, #tpu.memory_space<vmem>>, vector<1x1x32xf32>
    %99 = vector.shape_cast %98 : vector<1x1x32xf32> to vector<1x32xf32>
    %100 = vector.broadcast %99 : vector<1x32xf32> to vector<16x32xf32>
    %101 = arith.addf %97, %100 : vector<16x32xf32>
    %cst_65 = arith.constant dense<0.000000e+00> : vector<16x16xf32>
    %102 = tpu.matmul %94, %30, %cst_65 {dimension_numbers = #tpu.dot_dimension_numbers<[1], [1], [0], [0], [0, 0, 1, 0], [], []>} : vector<16x32xf32>, vector<16x32xf32>, vector<16x16xf32> -> vector<16x16xf32>
    %103 = arith.addf %102, %1 : vector<16x16xf32>
    %cst_66 = arith.constant dense<0xFF800000> : vector<16xf32>
    %104 = vector.multi_reduction <maximumf>, %103, %cst_66 [1] : vector<16x16xf32> to vector<16xf32>
    %105 = vector.shape_cast %104 : vector<16xf32> to vector<16x1xf32>
    %106 = vector.broadcast %105 : vector<16x1xf32> to vector<16x16xf32>
    %107 = arith.subf %103, %106 : vector<16x16xf32>
    %108 = math.exp %107 : vector<16x16xf32>
    %cst_67 = arith.constant dense<0.000000e+00> : vector<16xf32>
    %109 = vector.multi_reduction <add>, %108, %cst_67 [1] : vector<16x16xf32> to vector<16xf32>
    %110 = vector.shape_cast %109 : vector<16xf32> to vector<16x1xf32>
    %111 = tpu.reciprocal %110 {approx = true} : vector<16x1xf32> -> vector<16x1xf32>
    %112 = vector.broadcast %111 : vector<16x1xf32> to vector<16x16xf32>
    %113 = arith.mulf %108, %112 : vector<16x16xf32>
    %cst_68 = arith.constant dense<0.000000e+00> : vector<16x32xf32>
    %114 = tpu.matmul %113, %101, %cst_68 {dimension_numbers = #tpu.dot_dimension_numbers<[1], [0], [0], [1], [0, 0, 1, 1], [], []>} : vector<16x16xf32>, vector<16x32xf32>, vector<16x32xf32> -> vector<16x32xf32>
    %115 = arith.addf %87, %114 : vector<16x32xf32>
    %c3 = arith.constant 3 : index
    %c0_69 = arith.constant 0 : index
    %c0_70 = arith.constant 0 : index
    %116 = vector.load %arg4[%c3, %c0_69, %c0_70] : memref<4x32x32xf32, #tpu.memory_space<vmem>>, vector<1x32x32xf32>
    %117 = vector.shape_cast %116 : vector<1x32x32xf32> to vector<32x32xf32>
    %cst_71 = arith.constant dense<0.000000e+00> : vector<16x32xf32>
    %118 = tpu.matmul %25, %117, %cst_71 {dimension_numbers = #tpu.dot_dimension_numbers<[1], [0], [0], [1], [0, 0, 1, 1], [], []>} : vector<16x32xf32>, vector<32x32xf32>, vector<16x32xf32> -> vector<16x32xf32>
    %c3_72 = arith.constant 3 : index
    %c0_73 = arith.constant 0 : index
    %c0_74 = arith.constant 0 : index
    %119 = vector.load %arg5[%c3_72, %c0_73, %c0_74] : memref<4x1x32xf32, #tpu.memory_space<vmem>>, vector<1x1x32xf32>
    %120 = vector.shape_cast %119 : vector<1x1x32xf32> to vector<1x32xf32>
    %121 = vector.broadcast %120 : vector<1x32xf32> to vector<16x32xf32>
    %122 = arith.addf %118, %121 : vector<16x32xf32>
    %c3_75 = arith.constant 3 : index
    %c0_76 = arith.constant 0 : index
    %c0_77 = arith.constant 0 : index
    %123 = vector.load %arg8[%c3_75, %c0_76, %c0_77] : memref<4x32x32xf32, #tpu.memory_space<vmem>>, vector<1x32x32xf32>
    %124 = vector.shape_cast %123 : vector<1x32x32xf32> to vector<32x32xf32>
    %cst_78 = arith.constant dense<0.000000e+00> : vector<16x32xf32>
    %125 = tpu.matmul %25, %124, %cst_78 {dimension_numbers = #tpu.dot_dimension_numbers<[1], [0], [0], [1], [0, 0, 1, 1], [], []>} : vector<16x32xf32>, vector<32x32xf32>, vector<16x32xf32> -> vector<16x32xf32>
    %c3_79 = arith.constant 3 : index
    %c0_80 = arith.constant 0 : index
    %c0_81 = arith.constant 0 : index
    %126 = vector.load %arg9[%c3_79, %c0_80, %c0_81] : memref<4x1x32xf32, #tpu.memory_space<vmem>>, vector<1x1x32xf32>
    %127 = vector.shape_cast %126 : vector<1x1x32xf32> to vector<1x32xf32>
    %128 = vector.broadcast %127 : vector<1x32xf32> to vector<16x32xf32>
    %129 = arith.addf %125, %128 : vector<16x32xf32>
    %cst_82 = arith.constant dense<0.000000e+00> : vector<16x16xf32>
    %130 = tpu.matmul %122, %30, %cst_82 {dimension_numbers = #tpu.dot_dimension_numbers<[1], [1], [0], [0], [0, 0, 1, 0], [], []>} : vector<16x32xf32>, vector<16x32xf32>, vector<16x16xf32> -> vector<16x16xf32>
    %131 = arith.addf %130, %1 : vector<16x16xf32>
    %cst_83 = arith.constant dense<0xFF800000> : vector<16xf32>
    %132 = vector.multi_reduction <maximumf>, %131, %cst_83 [1] : vector<16x16xf32> to vector<16xf32>
    %133 = vector.shape_cast %132 : vector<16xf32> to vector<16x1xf32>
    %134 = vector.broadcast %133 : vector<16x1xf32> to vector<16x16xf32>
    %135 = arith.subf %131, %134 : vector<16x16xf32>
    %136 = math.exp %135 : vector<16x16xf32>
    %cst_84 = arith.constant dense<0.000000e+00> : vector<16xf32>
    %137 = vector.multi_reduction <add>, %136, %cst_84 [1] : vector<16x16xf32> to vector<16xf32>
    %138 = vector.shape_cast %137 : vector<16xf32> to vector<16x1xf32>
    %139 = tpu.reciprocal %138 {approx = true} : vector<16x1xf32> -> vector<16x1xf32>
    %140 = vector.broadcast %139 : vector<16x1xf32> to vector<16x16xf32>
    %141 = arith.mulf %136, %140 : vector<16x16xf32>
    %cst_85 = arith.constant dense<0.000000e+00> : vector<16x32xf32>
    %142 = tpu.matmul %141, %129, %cst_85 {dimension_numbers = #tpu.dot_dimension_numbers<[1], [0], [0], [1], [0, 0, 1, 1], [], []>} : vector<16x16xf32>, vector<16x32xf32>, vector<16x32xf32> -> vector<16x32xf32>
    %143 = arith.addf %115, %142 : vector<16x32xf32>
    %144 = arith.addf %0, %143 : vector<16x32xf32>
    %c0_86 = arith.constant 0 : index
    %c0_87 = arith.constant 0 : index
    %145 = vector.load %arg10[%c0_86, %c0_87] : memref<1x32xf32, #tpu.memory_space<vmem>>, vector<1x32xf32>
    %146 = vector.broadcast %145 : vector<1x32xf32> to vector<16x32xf32>
    %147 = arith.addf %144, %146 : vector<16x32xf32>
    %c0_88 = arith.constant 0 : index
    %c0_89 = arith.constant 0 : index
    %148 = vector.load %arg11[%c0_88, %c0_89] : memref<1x32xf32, #tpu.memory_space<vmem>>, vector<1x32xf32>
    %c0_90 = arith.constant 0 : index
    %c0_91 = arith.constant 0 : index
    %149 = vector.load %arg12[%c0_90, %c0_91] : memref<1x32xf32, #tpu.memory_space<vmem>>, vector<1x32xf32>
    %cst_92 = arith.constant dense<0.000000e+00> : vector<16xf32>
    %150 = vector.multi_reduction <add>, %147, %cst_92 [1] : vector<16x32xf32> to vector<16xf32>
    %151 = vector.shape_cast %150 : vector<16xf32> to vector<16x1xf32>
    %cst_93 = arith.constant 3.200000e+01 : f32
    %152 = vector.broadcast %cst_93 : f32 to vector<16x1xf32>
    %153 = arith.divf %151, %152 : vector<16x1xf32>
    %154 = vector.broadcast %153 : vector<16x1xf32> to vector<16x32xf32>
    %155 = arith.subf %147, %154 : vector<16x32xf32>
    %156 = arith.mulf %155, %155 : vector<16x32xf32>
    %cst_94 = arith.constant dense<0.000000e+00> : vector<16xf32>
    %157 = vector.multi_reduction <add>, %156, %cst_94 [1] : vector<16x32xf32> to vector<16xf32>
    %158 = vector.shape_cast %157 : vector<16xf32> to vector<16x1xf32>
    %cst_95 = arith.constant 3.200000e+01 : f32
    %159 = vector.broadcast %cst_95 : f32 to vector<16x1xf32>
    %160 = arith.divf %158, %159 : vector<16x1xf32>
    %161 = vector.broadcast %153 : vector<16x1xf32> to vector<16x32xf32>
    %162 = arith.subf %147, %161 : vector<16x32xf32>
    %cst_96 = arith.constant 9.99999974E-6 : f32
    %163 = vector.broadcast %cst_96 : f32 to vector<16x1xf32>
    %164 = arith.addf %160, %163 : vector<16x1xf32>
    %165 = math.rsqrt %164 : vector<16x1xf32>
    %166 = vector.broadcast %165 : vector<16x1xf32> to vector<16x32xf32>
    %167 = arith.mulf %162, %166 : vector<16x32xf32>
    %168 = vector.broadcast %148 : vector<1x32xf32> to vector<16x32xf32>
    %169 = arith.mulf %167, %168 : vector<16x32xf32>
    %170 = vector.broadcast %149 : vector<1x32xf32> to vector<16x32xf32>
    %171 = arith.addf %169, %170 : vector<16x32xf32>
    %c0_97 = arith.constant 0 : index
    %c0_98 = arith.constant 0 : index
    %172 = vector.load %arg13[%c0_97, %c0_98] : memref<32x128xf32, #tpu.memory_space<vmem>>, vector<32x128xf32>
    %cst_99 = arith.constant dense<0.000000e+00> : vector<16x128xf32>
    %173 = tpu.matmul %171, %172, %cst_99 {dimension_numbers = #tpu.dot_dimension_numbers<[1], [0], [0], [1], [0, 0, 1, 1], [], []>} : vector<16x32xf32>, vector<32x128xf32>, vector<16x128xf32> -> vector<16x128xf32>
    %c0_100 = arith.constant 0 : index
    %c0_101 = arith.constant 0 : index
    %174 = vector.load %arg14[%c0_100, %c0_101] : memref<1x128xf32, #tpu.memory_space<vmem>>, vector<1x128xf32>
    %175 = vector.broadcast %174 : vector<1x128xf32> to vector<16x128xf32>
    %176 = arith.addf %173, %175 : vector<16x128xf32>
    %cst_102 = arith.constant 5.000000e-01 : f32
    %177 = vector.broadcast %cst_102 : f32 to vector<16x128xf32>
    %178 = arith.mulf %177, %176 : vector<16x128xf32>
    %cst_103 = arith.constant 4.471500e-02 : f32
    %179 = vector.broadcast %cst_103 : f32 to vector<16x128xf32>
    %180 = arith.mulf %179, %176 : vector<16x128xf32>
    %181 = arith.mulf %180, %176 : vector<16x128xf32>
    %182 = arith.mulf %181, %176 : vector<16x128xf32>
    %183 = arith.addf %176, %182 : vector<16x128xf32>
    %cst_104 = arith.constant 0.797884583 : f32
    %184 = vector.broadcast %cst_104 : f32 to vector<16x128xf32>
    %185 = arith.mulf %184, %183 : vector<16x128xf32>
    %186 = math.tanh %185 : vector<16x128xf32>
    %cst_105 = arith.constant 1.000000e+00 : f32
    %187 = vector.broadcast %cst_105 : f32 to vector<16x128xf32>
    %188 = arith.addf %187, %186 : vector<16x128xf32>
    %189 = arith.mulf %178, %188 : vector<16x128xf32>
    %c0_106 = arith.constant 0 : index
    %c0_107 = arith.constant 0 : index
    %190 = vector.load %arg15[%c0_106, %c0_107] : memref<128x32xf32, #tpu.memory_space<vmem>>, vector<128x32xf32>
    %cst_108 = arith.constant dense<0.000000e+00> : vector<16x32xf32>
    %191 = tpu.matmul %189, %190, %cst_108 {dimension_numbers = #tpu.dot_dimension_numbers<[1], [0], [0], [1], [0, 0, 1, 1], [], []>} : vector<16x128xf32>, vector<128x32xf32>, vector<16x32xf32> -> vector<16x32xf32>
    %c0_109 = arith.constant 0 : index
    %c0_110 = arith.constant 0 : index
    %192 = vector.load %arg16[%c0_109, %c0_110] : memref<1x32xf32, #tpu.memory_space<vmem>>, vector<1x32xf32>
    %193 = vector.broadcast %192 : vector<1x32xf32> to vector<16x32xf32>
    %194 = arith.addf %191, %193 : vector<16x32xf32>
    %195 = arith.addf %147, %194 : vector<16x32xf32>
    %c0_111 = arith.constant 0 : index
    %c0_112 = arith.constant 0 : index
    %196 = vector.load %arg17[%c0_111, %c0_112] : memref<16x32xf32, #tpu.memory_space<vmem>>, vector<16x32xf32>
    tpu.vector_store %arg17[%c0_111, %c0_112], %195 {strides = array<i32>} : memref<16x32xf32, #tpu.memory_space<vmem>>, vector<16x32xf32>,
    return
  }
}

</mosaic_0001>

<bundles_post_ra>
// kernel: tpu_custom_call.1
= control target key start
LH: loop header
LB: loop body
LE: loop exit
PB: predicated region body
PF: predicated region fallthrough
CT: control target
= control target key end

     0   :  { %s3201_s0 = inlined_call_operand.hbm [shape: f32[16,32], index: 0, kind: input, shape index: {}]   ;;  %s3202_s1 = inlined_call_operand.hbm [shape: f32[16,16], index: 1, kind: input, shape index: {}]   ;;  %s3203_s2 = inlined_call_operand.vmem [shape: f32[1,32], index: 2, kind: input, shape index: {}]   ;;  %s3204_s3 = inlined_call_operand.vmem [shape: f32[1,32], index: 3, kind: input, shape index: {}]   ;;  %s3205_s4 = inlined_call_operand.vmem [shape: f32[4,32,32], index: 4, kind: input, shape index: {}]   ;;  %s3206_s5 = inlined_call_operand.vmem [shape: f32[4,1,32], index: 5, kind: input, shape index: {}]   ;;  %s3207_s6 = inlined_call_operand.vmem [shape: f32[32,32], index: 6, kind: input, shape index: {}]   ;;  %s3208_s7 = inlined_call_operand.vmem [shape: f32[1,32], index: 7, kind: input, shape index: {}]   ;;  %s3209_s8 = inlined_call_operand.hbm [shape: f32[4,32,32], index: 8, kind: input, shape index: {}]   ;;  %s3210_s9 = inlined_call_operand.vmem [shape: f32[4,1,32], index: 9, kind: input, shape index: {}]   ;;  %s3211_s10 = inlined_call_operand.vmem [shape: f32[1,32], index: 10, kind: input, shape index: {}]   ;;  %s3212_s11 = inlined_call_operand.vmem [shape: f32[1,32], index: 11, kind: input, shape index: {}]   ;;  %s3213_s12 = inlined_call_operand.vmem [shape: f32[1,32], index: 12, kind: input, shape index: {}]   ;;  %s3214_s13 = inlined_call_operand.hbm [shape: f32[32,128], index: 13, kind: input, shape index: {}]   ;;  %s3215_s14 = inlined_call_operand.vmem [shape: f32[1,128], index: 14, kind: input, shape index: {}]   ;;  %s3216_s15 = inlined_call_operand.vmem [shape: f32[128,32], index: 15, kind: input, shape index: {}]   ;;  %s3217_s16 = inlined_call_operand.vmem [shape: f32[1,32], index: 16, kind: input, shape index: {}]   ;;  %s3218_s17 = inlined_call_operand.hbm [shape: f32[16,32], index: 17, kind: output, shape index: {}]  }
   0x1   :  { %3222 = sst [smem:[#allocation15_spill]] %s3201_s0 }
   0x2   :  { %3223 = sst [smem:[#allocation16_spill]] %s3202_s1 }
   0x3   :  { %3224 = sst [smem:[#allocation17_spill]] %s3217_s16 }
   0x4   :  { %3225 = sst [smem:[#allocation18_spill]] %s3218_s17 }
   0x5   :  { %22 = vsyncpa [#allocation3], 0 }
   0x6   :  { %23 = vsyncpa [#allocation6], 0 }
   0x7   :  { %24 = vsyncpa [#allocation9], 0 }
   0x8   :  { %25 = vsyncpa [#allocation4], 0  ;;  %s2703_s24 = smov [#allocation5]   ;;  %s2704_s26 = smov [#allocation2]  }
   0x9   :  { %s43_s25 = sshll.u32 %s2703_s24, 4  ;;  %s31_s27 = sshll.u32 %s2704_s26, 4  ;;  %s44_s25 = int_to_ptr.vmem [resolvable:$true] %s43_s25  ;;  %s2800_s27 = int_to_ptr.vmem [resolvable:$true] %s31_s27 }
   0xa   :  { %s3226_s0 = sld [smem:[#allocation16_spill]] }
  0x10   :  { %s2585_s30 = scalar_lea.hbm %s3226_s0, 256 }
  0x11   :  { %p2586_p0 = scmp.ne.s32.totalorder %s3226_s0, %s2585_s30  ;;  %p2589_p1 = scmp.lt.u32.totalorder %s2585_s30, %s3226_s0 }
  0x13   :  { %p2591_p2 = pnand %p2589_p1, %p2586_p0 }
  0x15   :  { %2594 = shalt.err (!%p2591_p2)
}
  0x16   :  { %s2595_s21 = scalar_lea.vmem %s44_s25, 256  ;;  %p2600_p4 = scmp.lt.s32.totalorder %s44_s25, %s44_s25 }
  0x17   :  { %p2596_p3 = scmp.ne.s32.totalorder %s44_s25, %s2595_s21  ;;  %p2601_p5 = scmp.lt.s32.totalorder %s2595_s21, %s2595_s21 }
  0x19   :  { %p2602_p6 = por %p2601_p5, %p2600_p4 }
  0x1b   :  { %p2603_p7 = pnand %p2602_p6, %p2596_p3 }
  0x1d   :  { %2606 = shalt.err (!%p2603_p7)
}
  0x1e   :  { %s2705_s22 = smov 128   ;;  %s2706_s23 = smov 8  }
  0x1f   :  { %49 = dma.hbm_to_vmem [thread:$0]  %s3226_s0, 256, %s44_s25, [#allocation6], %s2705_s22, %s2705_s22, %s2706_s23  }
  0x20   :  { %s3227_s30 = sld [smem:[#allocation15_spill]] }
  0x26   :  { %s2607_s18 = scalar_lea.hbm %s3227_s30, 256 }
  0x27   :  { %p2608_p8 = scmp.ne.s32.totalorder %s3227_s30, %s2607_s18  ;;  %p2611_p9 = scmp.lt.u32.totalorder %s2607_s18, %s3227_s30 }
  0x29   :  { %p2613_p10 = pnand %p2611_p9, %p2608_p8 }
  0x2b   :  { %2616 = shalt.err (!%p2613_p10)
}
  0x2c   :  { %s2617_s17 = scalar_lea.vmem %s2800_s27, 256  ;;  %p2622_p12 = scmp.lt.s32.totalorder %s2800_s27, %s2800_s27 }
  0x2d   :  { %p2618_p11 = scmp.ne.s32.totalorder %s2800_s27, %s2617_s17  ;;  %p2623_p13 = scmp.lt.s32.totalorder %s2617_s17, %s2617_s17 }
  0x2f   :  { %p2624_p0 = por %p2623_p13, %p2622_p12 }
  0x31   :  { %p2625_p1 = pnand %p2624_p0, %p2618_p11 }
  0x33   :  { %2628 = shalt.err (!%p2625_p1)
}
  0x34   :  { %37 = dma.hbm_to_vmem [thread:$0]  %s3227_s30, 256, %s2800_s27, [#allocation3], %s2705_s22, %s2705_s22, %s2706_s23  }
  0x35   :  { %s2707_s24 = smov [#allocation7]   ;;  %s2708_s28 = smov [#allocation8]  }
  0x36   :  { %s67_s26 = sshll.u32 %s2707_s24, 4  ;;  %s87_s29 = sshll.u32 %s2708_s28, 4  ;;  %s68_s26 = int_to_ptr.vmem [resolvable:$true] %s67_s26  ;;  %s2837_s29 = int_to_ptr.vmem [resolvable:$true] %s87_s29 }
  0x37   :  { %s2629_s19 = scalar_lea.hbm %s3209_s8, 2048 }
  0x38   :  { %p2630_p2 = scmp.ne.s32.totalorder %s3209_s8, %s2629_s19  ;;  %p2633_p3 = scmp.lt.u32.totalorder %s2629_s19, %s3209_s8 }
  0x3a   :  { %p2635_p4 = pnand %p2633_p3, %p2630_p2 }
  0x3c   :  { %2638 = shalt.err (!%p2635_p4)
}
  0x3d   :  { %s2639_s27 = scalar_lea.vmem %s68_s26, 2048  ;;  %p2644_p6 = scmp.lt.s32.totalorder %s68_s26, %s68_s26 }
  0x3e   :  { %p2640_p5 = scmp.ne.s32.totalorder %s68_s26, %s2639_s27  ;;  %p2645_p7 = scmp.lt.s32.totalorder %s2639_s27, %s2639_s27 }
  0x40   :  { %p2646_p8 = por %p2645_p7, %p2644_p6 }
  0x42   :  { %p2647_p9 = pnand %p2646_p8, %p2640_p5 }
  0x44   :  { %2650 = shalt.err (!%p2647_p9)
}
  0x45   :  { %73 = dma.hbm_to_vmem [thread:$0]  %s3209_s8, 2048, %s68_s26, [#allocation6], %s2705_s22, %s2705_s22, %s2706_s23  }
  0x46   :  { %s2651_s16 = scalar_lea.hbm %s3214_s13, 512 }
  0x47   :  { %p2652_p10 = scmp.ne.s32.totalorder %s3214_s13, %s2651_s16  ;;  %p2655_p11 = scmp.lt.u32.totalorder %s2651_s16, %s3214_s13 }
  0x49   :  { %p2657_p12 = pnand %p2655_p11, %p2652_p10 }
  0x4b   :  { %2660 = shalt.err (!%p2657_p12)
}
  0x4c   :  { %s2661_s1 = scalar_lea.vmem %s2837_s29, 512  ;;  %p2666_p0 = scmp.lt.s32.totalorder %s2837_s29, %s2837_s29 }
  0x4d   :  { %p2662_p13 = scmp.ne.s32.totalorder %s2837_s29, %s2661_s1  ;;  %p2667_p1 = scmp.lt.s32.totalorder %s2661_s1, %s2661_s1 }
  0x4f   :  { %p2668_p2 = por %p2667_p1, %p2666_p0 }
  0x51   :  { %p2669_p3 = pnand %p2668_p2, %p2662_p13 }
  0x53   :  { %2672 = shalt.err (!%p2669_p3)
}
  0x54   :  { %93 = dma.hbm_to_vmem [thread:$0]  %s3214_s13, 512, %s2837_s29, [#allocation9], %s2705_s22, %s2705_s22, %s2706_s23  }
  0x55   :  { %2695 = dma.done.wait [#allocation3], 256  }
  0x56   :  { %2696 = vsyncadd [#allocation3], 4294967040 }
  0x57   :  { %2697 = dma.done.wait [#allocation6], 2304  }
  0x58   :  { %2698 = vsyncadd [#allocation6], 4294964992 }
  0x59   :  { %2699 = dma.done.wait [#allocation9], 512  }
  0x5a   :  { %2700 = vsyncadd [#allocation9], 4294966784  ;;  %vm118_vm0 = vcmask 261120   ;;  %v2874_v0 = vld [vmem:[#allocation2] sm:$0xff]  ;;  %v2876_v1 = vld [vmem:[#allocation2 + $0x8] sm:$0xff]  ;;  %vm513_vm2 = vcmask 130048  }
  0x5b   :  { %v119_v2 = vsel %vm118_vm0, %v2874_v0, 0.0  ;;  %v122_v3 = vsel %vm118_vm0, %v2876_v1, 0.0  ;;  %v162_v14 = vld [vmem:[%s3207_s6] sm:$0xff]  ;;  %v163_v15 = vld [vmem:[%s3207_s6 + $0x8] sm:$0xff]  ;;  %v164_v20 = vld [vmem:[%s3207_s6 + $0x10] sm:$0xff] }
  0x5c   :  { %120 = vadd.xlane.f32.xlu0 %v119_v2  ;;  %v2376_v16 = vpack.c.bf16 %v163_v15, %v162_v14  ;;  %v2002_v17 = vld [vmem:[%s3205_s4 + $0x20] sm:$0xff]  ;;  %v2003_v18 = vld [vmem:[%s3205_s4 + $0x28] sm:$0xff]  ;;  %v165_v21 = vld [vmem:[%s3207_s6 + $0x18] sm:$0xff] }
  0x5d   :  { %v2406_v19 = vpack.c.bf16 %v2003_v18, %v2002_v17  ;;  %v2380_v22 = vpack.c.bf16 %v165_v21, %v164_v20  ;;  %v2004_v23 = vld [vmem:[%s3205_s4 + $0x30] sm:$0xff]  ;;  %v2005_v24 = vld [vmem:[%s3205_s4 + $0x38] sm:$0xff]  ;;  %v254_v26 = vld [vmem:[%s3205_s4] sm:$0xff] }
  0x5e   :  { %2377 = vmatprep.subr.bf16.mxu1 %v2376_v16  ;;  %v2410_v25 = vpack.c.bf16 %v2005_v24, %v2004_v23  ;;  %v255_v27 = vld [vmem:[%s3205_s4 + $0x8] sm:$0xff]  ;;  %v1987_v36 = vld [vmem:[%s3203_s2] ss:$0 sm:$0xff]  ;;  %v256_v43 = vld [vmem:[%s3205_s4 + $0x10] sm:$0xff]  ;;  %s3230_s2 = sld [smem:[#allocation17_spill]] }
  0x5f   :  { %2379 = vmatpush3.bf16.msra.mxu1 %v2376_v16  ;;  %2407 = vmatprep.subr.bf16.mxu0 %v2406_v19  ;;  %v2384_v28 = vpack.c.bf16 %v255_v27, %v254_v26  ;;  %v1988_v38 = vld [vmem:[%s3204_s3] ss:$0 sm:$0xff]  ;;  %v257_v44 = vld [vmem:[%s3205_s4 + $0x18] sm:$0xff]  ;;  %v341_v49 = vld [vmem:[#allocation7 + $0x8] sm:$0xff] }
  0x60   :  { %123 = vadd.xlane.f32.xlu0 %v122_v3  ;;  %2409 = vmatpush3.bf16.msra.mxu0 %v2406_v19  ;;  %v2388_v47 = vpack.c.bf16 %v257_v44, %v256_v43  ;;  %v340_v48 = vld [vmem:[#allocation7] sm:$0xff]  ;;  %v342_v51 = vld [vmem:[#allocation7 + $0x10] sm:$0xff]  ;;  %v343_v52 = vld [vmem:[#allocation7 + $0x18] sm:$0xff] }
  0x61   :  { %2381 = vmatprep.subr.bf16.mxu1 %v2380_v22  ;;  %2411 = vmatprep.subr.bf16.mxu0 %v2410_v25  ;;  %v2392_v50 = vpack.c.bf16 %v341_v49, %v340_v48  ;;  %v2396_v53 = vpack.c.bf16 %v343_v52, %v342_v51  ;;  %v1989_v54 = vld [vmem:[%s3208_s7] ss:$0 sm:$0xff]  ;;  %v2007_v55 = vld [vmem:[%s3206_s5 + $0x1] ss:$0 sm:$0xff]  ;;  %v626_v62 = vld [vmem:[#allocation7 + $0x28] sm:$0xff] }
  0x62   :  { %v625_v58 = vld [vmem:[#allocation7 + $0x20] sm:$0xff]  ;;  %v2023_v2 = vld [vmem:[%s3205_s4 + $0x48] sm:$0xff]  ;;  %vm2962_vm1 = vmpackc.low %vm118_vm0, %vm118_vm0 }
  0x63   :  { %2383 = vmatpush3.bf16.msra.mxu1 %v2380_v22  ;;  %v2022_v63 = vld [vmem:[%s3205_s4 + $0x40] sm:$0xff]  ;;  %v628_v14 = vld [vmem:[#allocation7 + $0x38] sm:$0xff]  ;;  %v2024_v15 = vld [vmem:[%s3205_s4 + $0x50] sm:$0xff] }
  0x64   :  { %2413 = vmatpush3.bf16.msra.mxu0 %v2410_v25  ;;  %2385 = vmatprep.subr.bf16.mxu1 %v2384_v28  ;;  %v2025_v16 = vld [vmem:[%s3205_s4 + $0x58] sm:$0xff]  ;;  %v1995_v21 = vld [vmem:[%s3210_s9] ss:$0 sm:$0xff]  ;;  %v2011_v43 = vld [vmem:[%s3210_s9 + $0x1] ss:$0 sm:$0xff] }
  0x65   :  { %v2440_v20 = vpack.c.bf16 %v2025_v16, %v2024_v15  ;;  %v1428_v27 = vld [vmem:[#allocation7 + $0x60] sm:$0xff]  ;;  %v1430_v52 = vld [vmem:[#allocation7 + $0x70] sm:$0xff] }
  0xe9   :  { %v121_v4 = vpop.xlane.xlu0 %120 }
  0xea   :  { %v126_v5 = vmul.f32 0.03125, %v121_v4 }
  0xec   :  { %v128_v6 = vsub.f32 %v2874_v0, %v126_v5 }
  0xed   :  { %v124_v7 = vpop.xlane.xlu0 %123 }
  0xee   :  { %v127_v8 = vmul.f32 0.03125, %v124_v7  ;;  %v130_v9 = vmul.f32 %v128_v6, %v128_v6  ;;  %v2414_v7 = vpack.c.bf16 %v626_v62, %v625_v58 }
  0xf0   :  { %v129_v10 = vsub.f32 %v2876_v1, %v127_v8  ;;  %v132_v11 = vsel %vm118_vm0, %v130_v9, 0.0  ;;  %v2436_v8 = vpack.c.bf16 %v2023_v2, %v2022_v63  ;;  %v1992_v9 = vld [vmem:[%s3206_s5] ss:$0 sm:$0xff] }
  0xf1   :  { %133 = vadd.xlane.f32.xlu1 %v132_v11 }
  0xf2   :  { %v131_v12 = vmul.f32 %v129_v10, %v129_v10 }
  0xf4   :  { %v135_v13 = vsel %vm118_vm0, %v131_v12, 0.0  ;;  %v627_v12 = vld [vmem:[#allocation7 + $0x30] sm:$0xff] }
  0xf5   :  { %136 = vadd.xlane.f32.xlu1 %v135_v13  ;;  %v2418_v19 = vpack.c.bf16 %v628_v14, %v627_v12 }
 0x17e   :  { %v134_v29 = vpop.xlane.xlu1 %133 }
 0x17f   :  { %v138_v30 = vmul.f32 0.03125, %v134_v29 }
 0x181   :  { %v140_v31 = vadd.f32 1e-05, %v138_v30  ;;  %v3012_v30 = vld [vmem:[#allocation5 + $0x8] sm:$0xff] }
 0x182   :  { %v137_v32 = vpop.xlane.xlu1 %136 }
 0x183   :  { %2541 = vrsqrt.f32 %v140_v31  ;;  %v139_v33 = vmul.f32 0.03125, %v137_v32  ;;  %v3014_v31 = vld [vmem:[#allocation5] sm:$0xff] }
 0x185   :  { %v141_v34 = vadd.f32 1e-05, %v139_v33 }
 0x187   :  { %2543 = vrsqrt.f32 %v141_v34 }
 0x18d   :  { %v2542_v35 = vpop.eup %2541 }
 0x18e   :  { %v144_v37 = vmul.f32 %v2542_v35, %v128_v6 }
 0x190   :  { %v152_v39 = vmul.f32 %v1987_v36, %v144_v37 }
 0x191   :  { %v2544_v40 = vpop.eup %2543 }
 0x192   :  { %v2922_v41 = vadd.f32 %v1988_v38, %v152_v39  ;;  %v145_v42 = vmul.f32 %v2544_v40, %v129_v10 }
 0x194   :  { %v153_v45 = vmul.f32 %v1987_v36, %v145_v42  ;;  %2183 = vmatprep.mubr.msk.f32.mxu1 %vm118_vm0, %v2922_v41  ;;  %2223 = vmatprep.mubr.msk.f32.mxu0 %vm118_vm0, %v2922_v41 }
 0x196   :  { %v2934_v46 = vadd.f32 %v1988_v38, %v153_v45  ;;  %v2027_v45 = vld [vmem:[%s3206_s5 + $0x2] ss:$0 sm:$0xff] }
 0x198   :  { %2184 = vmatmul.mubr.msk.f32.vlgmr.msra.gmra.mrb[0].mxu1 %vm118_vm0, %v2934_v46  ;;  %2224 = vmatmul.mubr.msk.f32.vlgmr.msra.gmra.mrb[0].mxu0 %vm118_vm0, %v2934_v46 }
 0x199   :  { %2387 = vmatpush3.bf16.msra.mxu1 %v2384_v28  ;;  %2194 = vmatprep.mubr.msk.f32.mxu1 %vm118_vm0, %v2922_v41  ;;  %v1429_v28 = vld [vmem:[#allocation7 + $0x68] sm:$0xff] }
 0x19a   :  { %2389 = vmatprep.subr.bf16.mxu1 %v2388_v47  ;;  %v2470_v29 = vpack.c.bf16 %v1429_v28, %v1428_v27  ;;  %v2049_v27 = vld [vmem:[%s3210_s9 + $0x3] ss:$0 sm:$0xff] }
 0x19d   :  { %2391 = vmatpush3.bf16.msra.mxu1 %v2388_v47 }
 0x19e   :  { %2393 = vmatprep.subr.bf16.mxu1 %v2392_v50 }
 0x1a0   :  { %2195 = vmatmul.mubr.msk.f32.vlgmr.msra.gmra.mrb[2].mxu1 %vm118_vm0, %v2934_v46 }
 0x1a1   :  { %2395 = vmatpush3.bf16.msra.mxu1 %v2392_v50  ;;  %2205 = vmatprep.mubr.msk.f32.mxu1 %vm118_vm0, %v2922_v41 }
 0x1a2   :  { %2397 = vmatprep.subr.bf16.mxu1 %v2396_v53 }
 0x1a5   :  { %2399 = vmatpush3.bf16.msra.mxu1 %v2396_v53  ;;  %v1431_v53 = vld [vmem:[#allocation7 + $0x78] sm:$0xff] }
 0x1a8   :  { %2206 = vmatmul.mubr.msk.f32.vlgmr.msra.gmra.mrb[4].mxu1 %vm118_vm0, %v2934_v46 }
 0x26b   :  { %v2185_v56 = vpop.f32.mrb[0].mxu1  ;;  %v2225_v57 = vpop.f32.mrb[0].mxu0 }
 0x26c   :  { %v251_v59 = vadd.f32 %v2185_v56, %v1989_v54  ;;  %v245_v60 = vpop.f32.mrb[1].mxu1  ;;  %v615_v61 = vpop.f32.mrb[1].mxu0  ;;  %v621_v17 = vadd.f32 %v2225_v57, %v2007_v55 }
 0x26d   :  { %v246_v3 = vadd.f32 %v1989_v54, %v245_v60  ;;  %v616_v4 = vadd.f32 %v2007_v55, %v615_v61 }
 0x26f   :  { %v2966_v6 = vpack.c.bf16 %v251_v59, %v246_v3  ;;  %2241 = vmatprep.mubr.msk.f32.mxu0 %vm118_vm0, %v616_v4  ;;  %v2474_v59 = vpack.c.bf16 %v1431_v53, %v1430_v52  ;;  %v1069_v52 = vld [vmem:[#allocation7 + $0x58] sm:$0xff] }
 0x271   :  { %2402 = vmatprep.subr.msk.bf16.mxu1 %vm2962_vm1, %v2966_v6  ;;  %2424 = vmatprep.subr.msk.bf16.mxu0 %vm2962_vm1, %v2966_v6 }
 0x272   :  { %2405 = vmatpush3.bf16.xpose.msk.msra.mxu1 %vm2962_vm1, %v2966_v6  ;;  %2427 = vmatpush3.bf16.xpose.msk.msra.mxu0 %vm2962_vm1, %v2966_v6 }
 0x273   :  { %v2196_v10 = vpop.f32.mrb[2].mxu1  ;;  %2415 = vmatprep.subr.bf16.mxu1 %v2414_v7  ;;  %2437 = vmatprep.subr.bf16.mxu0 %v2436_v8 }
 0x274   :  { %v331_v11 = vpop.f32.mrb[3].mxu1  ;;  %v337_v18 = vadd.f32 %v2196_v10, %v1992_v9 }
 0x275   :  { %v332_v13 = vadd.f32 %v1992_v9, %v331_v11 }
 0x277   :  { %2212 = vmatprep.mubr.msk.f32.mxu1 %vm118_vm0, %v332_v13 }
 0x279   :  { %2213 = vmatmul.mubr.msk.f32.vlgmr.msra.gmra.mrb[6].mxu1 %vm118_vm0, %v337_v18  ;;  %2242 = vmatmul.mubr.msk.f32.vlgmr.msra.gmra.mrb[2].mxu0 %vm118_vm0, %v621_v17 }
 0x27a   :  { %2417 = vmatpush3.bf16.msra.mxu1 %v2414_v7  ;;  %2234 = vmatprep.mubr.msk.f32.mxu1 %vm118_vm0, %v2922_v41 }
 0x27b   :  { %v2207_v22 = vpop.f32.mrb[4].mxu1  ;;  %2439 = vmatpush3.bf16.msra.mxu0 %v2436_v8  ;;  %2266 = vmatprep.mubr.msk.f32.mxu0 %vm118_vm0, %v2922_v41 }
 0x27c   :  { %v423_v23 = vadd.f32 %v2207_v22, %v1995_v21  ;;  %v417_v24 = vpop.f32.mrb[5].mxu1  ;;  %2419 = vmatprep.subr.bf16.mxu1 %v2418_v19  ;;  %2441 = vmatprep.subr.bf16.mxu0 %v2440_v20 }
 0x27d   :  { %v418_v25 = vadd.f32 %v1995_v21, %v417_v24 }
 0x27e   :  { %2421 = vmatpush3.bf16.msra.mxu1 %v2418_v19 }
 0x27f   :  { %v3000_v26 = vpack.c.bf16 %v423_v23, %v418_v25  ;;  %2443 = vmatpush3.bf16.msra.mxu0 %v2440_v20 }
 0x280   :  { %2454 = vmatprep.subr.msk.bf16.mxu0 %vm2962_vm1, %v2966_v6 }
 0x281   :  { %2235 = vmatmul.mubr.msk.f32.vlgmr.msra.gmra.mrb[8].mxu1 %vm118_vm0, %v2934_v46 }
 0x282   :  { %2267 = vmatmul.mubr.msk.f32.vlgmr.msra.gmra.mrb[4].mxu0 %vm118_vm0, %v2934_v46 }
 0x288   :  { %2457 = vmatpush3.bf16.xpose.msk.msra.mxu0 %vm2962_vm1, %v2966_v6 }
 0x289   :  { %2471 = vmatprep.subr.bf16.mxu0 %v2470_v29 }
 0x34c   :  { %v2214_v32 = vpop.f32.mrb[6].mxu1  ;;  %v2243_v33 = vpop.f32.mrb[2].mxu0 }
 0x34d   :  { %v790_v34 = vadd.f32 %v2243_v33, %v3012_v30  ;;  %v504_v35 = vpop.f32.mrb[7].mxu1  ;;  %v784_v36 = vpop.f32.mrb[3].mxu0  ;;  %v510_v38 = vadd.f32 %v2214_v32, %v3012_v30 }
 0x34e   :  { %v785_v37 = vadd.f32 %v784_v36, %v3014_v31  ;;  %v505_v40 = vadd.f32 %v504_v35, %v3014_v31 }
 0x34f   :  { %v796_v39 = vsel %vm513_vm2, %v790_v34, -inf  ;;  %v517_v44 = vsel %vm513_vm2, %v510_v38, -inf }
 0x350   :  { %797 = vmax.xlane.f32.xlu1 %v796_v39  ;;  %v793_v42 = vsel %vm513_vm2, %v785_v37, -inf  ;;  %v514_v48 = vsel %vm513_vm2, %v505_v40, -inf }
 0x351   :  { %794 = vmax.xlane.f32.xlu0 %v793_v42  ;;  %v1067_v42 = vld [vmem:[#allocation7 + $0x48] sm:$0xff] }
 0x354   :  { %518 = vmax.xlane.f32.xlu1 %v517_v44  ;;  %v2236_v47 = vpop.f32.mrb[8].mxu1 }
 0x355   :  { %v2268_v49 = vpop.f32.mrb[4].mxu0  ;;  %v709_v50 = vadd.f32 %v2236_v47, %v2011_v43  ;;  %v703_v51 = vpop.f32.mrb[9].mxu1  ;;  %515 = vmax.xlane.f32.xlu0 %v514_v48 }
 0x356   :  { %v704_v54 = vadd.f32 %v2011_v43, %v703_v51  ;;  %v1056_v55 = vpop.f32.mrb[5].mxu0  ;;  %v1062_v57 = vadd.f32 %v2268_v49, %v2027_v45  ;;  %v1068_v51 = vld [vmem:[#allocation7 + $0x50] sm:$0xff] }
 0x357   :  { %v1057_v56 = vadd.f32 %v2027_v45, %v1056_v55 }
 0x358   :  { %v2428_v58 = vpack.c.bf16 %v709_v50, %v704_v54  ;;  %v2448_v54 = vpack.c.bf16 %v1069_v52, %v1068_v51 }
 0x359   :  { %2284 = vmatprep.mubr.msk.f32.mxu0 %vm118_vm0, %v1057_v56 }
 0x35a   :  { %2285 = vmatmul.mubr.msk.f32.vlgmr.msra.gmra.mrb[6].mxu0 %vm118_vm0, %v1062_v57  ;;  %2429 = vmatprep.subr.bf16.mxu1 %v2428_v58 }
 0x35b   :  { %2473 = vmatpush3.bf16.msra.mxu0 %v2470_v29  ;;  %2313 = vmatprep.mubr.msk.f32.mxu0 %vm118_vm0, %v2922_v41 }
 0x35c   :  { %2431 = vmatpush3.bf16.msra.mxu1 %v2428_v58  ;;  %2475 = vmatprep.subr.bf16.mxu0 %v2474_v59 }
 0x35d   :  { %2433 = vmatprep.subr.bf16.mxu1 %v3000_v26 }
 0x35f   :  { %2477 = vmatpush3.bf16.msra.mxu0 %v2474_v59 }
 0x362   :  { %2314 = vmatmul.mubr.msk.f32.vlgmr.msra.gmra.mrb[8].mxu0 %vm118_vm0, %v2934_v46 }
 0x3dd   :  { %v798_v60 = vpop.xlane.xlu1 %797 }
 0x3de   :  { %v800_v61 = vsub.f32 %v790_v34, %v798_v60  ;;  %v795_v62 = vpop.xlane.xlu0 %794 }
 0x3df   :  { %v799_v63 = vsub.f32 %v785_v37, %v795_v62 }
 0x3e0   :  { %v803_v2 = vmul.f32 1.442695, %v800_v61 }
 0x3e1   :  { %v801_v3 = vmul.f32 1.442695, %v799_v63  ;;  %v519_v4 = vpop.xlane.xlu1 %518 }
 0x3e2   :  { %2545 = vpow2.f32 %v803_v2  ;;  %v521_v7 = vsub.f32 %v510_v38, %v519_v4  ;;  %v516_v8 = vpop.xlane.xlu0 %515 }
 0x3e3   :  { %2547 = vpow2.f32 %v801_v3  ;;  %v520_v9 = vsub.f32 %v505_v40, %v516_v8  ;;  %v1066_v40 = vld [vmem:[#allocation7 + $0x40] sm:$0xff] }
 0x3e4   :  { %v524_v10 = vmul.f32 1.442695, %v521_v7  ;;  %v2444_v47 = vpack.c.bf16 %v1067_v42, %v1066_v40  ;;  %v2031_v8 = vld [vmem:[%s3210_s9 + $0x2] ss:$0 sm:$0xff] }
 0x3e5   :  { %v522_v11 = vmul.f32 1.442695, %v520_v9 }
 0x3e6   :  { %2549 = vpow2.f32 %v524_v10 }
 0x3e7   :  { %2551 = vpow2.f32 %v522_v11 }
 0x3ec   :  { %v2546_v12 = vpop.eup %2545 }
 0x3ed   :  { %v2548_v13 = vpop.eup %2547  ;;  %v808_v14 = vsel %vm513_vm2, %v2546_v12, 0.0 }
 0x3ee   :  { %809 = vadd.xlane.f32.xlu1 %v808_v14  ;;  %v805_v15 = vsel %vm513_vm2, %v2548_v13, 0.0 }
 0x3ef   :  { %806 = vadd.xlane.f32.xlu0 %v805_v15 }
 0x3f0   :  { %v2550_v16 = vpop.eup %2549 }
 0x3f1   :  { %v2552_v17 = vpop.eup %2551  ;;  %v529_v18 = vsel %vm513_vm2, %v2550_v16, 0.0 }
 0x3f2   :  { %530 = vadd.xlane.f32.xlu1 %v529_v18  ;;  %v526_v19 = vsel %vm513_vm2, %v2552_v17, 0.0  ;;  %v2042_v18 = vld [vmem:[%s3205_s4 + $0x70] sm:$0xff] }
 0x3f3   :  { %527 = vadd.xlane.f32.xlu0 %v526_v19  ;;  %v2043_v19 = vld [vmem:[%s3205_s4 + $0x78] sm:$0xff] }
 0x42d   :  { %v2286_v20 = vpop.f32.mrb[6].mxu0 }
 0x42e   :  { %v1231_v21 = vadd.f32 %v2286_v20, %v3012_v30  ;;  %v1225_v22 = vpop.f32.mrb[7].mxu0 }
 0x42f   :  { %v1226_v23 = vadd.f32 %v1225_v22, %v3014_v31  ;;  %v2045_v22 = vld [vmem:[%s3206_s5 + $0x3] ss:$0 sm:$0xff] }
 0x430   :  { %v1237_v24 = vsel %vm513_vm2, %v1231_v21, -inf }
 0x431   :  { %1238 = vmax.xlane.f32.xlu1 %v1237_v24  ;;  %v1234_v25 = vsel %vm513_vm2, %v1226_v23, -inf }
 0x432   :  { %1235 = vmax.xlane.f32.xlu0 %v1234_v25 }
 0x435   :  { %v2315_v28 = vpop.f32.mrb[8].mxu0 }
 0x436   :  { %v1512_v29 = vadd.f32 %v2315_v28, %v2049_v27  ;;  %v1506_v32 = vpop.f32.mrb[9].mxu0 }
 0x437   :  { %v1507_v33 = vadd.f32 %v2049_v27, %v1506_v32 }
 0x439   :  { %v3048_v34 = vpack.c.bf16 %v1512_v29, %v1507_v33 }
 0x47b   :  { %v810_v35 = vpop.xlane.xlu1 %809 }
 0x47c   :  { %2553 = vrcp.f32 %v810_v35  ;;  %v807_v36 = vpop.xlane.xlu0 %806 }
 0x47d   :  { %2555 = vrcp.f32 %v807_v36 }
 0x47f   :  { %v531_v38 = vpop.xlane.xlu1 %530 }
 0x480   :  { %v528_v37 = vpop.xlane.xlu0 %527 }
 0x481   :  { %2557 = vrcp.f32 %v528_v37 }
 0x482   :  { %2559 = vrcp.f32 %v531_v38 }
 0x486   :  { %v2554_v39 = vpop.eup %2553 }
 0x487   :  { %v2556_v43 = vpop.eup %2555  ;;  %v814_v45 = vmul.f32 %v2554_v39, %v2546_v12  ;;  %v2040_v12 = vld [vmem:[%s3205_s4 + $0x60] sm:$0xff] }
 0x488   :  { %v813_v44 = vmul.f32 %v2556_v43, %v2548_v13  ;;  %v2041_v13 = vld [vmem:[%s3205_s4 + $0x68] sm:$0xff] }
 0x48a   :  { %2248 = vmatprep.mubr.msk.f32.mxu1 %vm513_vm2, %v813_v44 }
 0x48b   :  { %v2558_v48 = vpop.eup %2557  ;;  %2249 = vmatmul.mubr.msk.f32.vlgmr.msra.gmra.mrb[10].mxu1 %vm513_vm2, %v814_v45 }
 0x48c   :  { %2435 = vmatpush3.bf16.msra.mxu1 %v3000_v26  ;;  %v534_v49 = vmul.f32 %v2558_v48, %v2552_v17  ;;  %v2560_v50 = vpop.eup %2559 }
 0x48d   :  { %2445 = vmatprep.subr.bf16.mxu1 %v2444_v47  ;;  %v535_v53 = vmul.f32 %v2560_v50, %v2550_v16  ;;  %v2462_v16 = vpack.c.bf16 %v2041_v13, %v2040_v12 }
 0x48e   :  { %2255 = vmatprep.mubr.msk.f32.mxu1 %vm513_vm2, %v534_v49  ;;  %v2058_v49 = vld [vmem:[%s3211_s10] ss:$0 sm:$0xff] }
 0x493   :  { %2256 = vmatmul.mubr.msk.f32.vlgmr.msra.gmra.mrb[10].mxu1 %vm513_vm2, %v535_v53 }
 0x494   :  { %2447 = vmatpush3.bf16.msra.mxu1 %v2444_v47  ;;  %2277 = vmatprep.mubr.msk.f32.mxu1 %vm118_vm0, %v2922_v41 }
 0x495   :  { %2449 = vmatprep.subr.bf16.mxu1 %v2448_v54 }
 0x498   :  { %2451 = vmatpush3.bf16.msra.mxu1 %v2448_v54 }
 0x49b   :  { %2278 = vmatmul.mubr.msk.f32.vlgmr.msra.gmra.mrb[12].mxu1 %vm118_vm0, %v2934_v46 }
 0x4be   :  { %v1239_v26 = vpop.xlane.xlu1 %1238 }
 0x4bf   :  { %v1241_v55 = vsub.f32 %v1231_v21, %v1239_v26  ;;  %v1236_v56 = vpop.xlane.xlu0 %1235  ;;  %v2466_v21 = vpack.c.bf16 %v2043_v19, %v2042_v18 }
 0x4c0   :  { %v1240_v57 = vsub.f32 %v1226_v23, %v1236_v56 }
 0x4c1   :  { %v1244_v58 = vmul.f32 1.442695, %v1241_v55 }
 0x4c2   :  { %v1242_v59 = vmul.f32 1.442695, %v1240_v57 }
 0x4c3   :  { %2561 = vpow2.f32 %v1244_v58 }
 0x4c4   :  { %2563 = vpow2.f32 %v1242_v59 }
 0x4cd   :  { %v2562_v60 = vpop.eup %2561 }
 0x4ce   :  { %v2564_v61 = vpop.eup %2563  ;;  %v1249_v62 = vsel %vm513_vm2, %v2562_v60, 0.0 }
 0x4cf   :  { %1250 = vadd.xlane.f32.xlu1 %v1249_v62  ;;  %v1246_v63 = vsel %vm513_vm2, %v2564_v61, 0.0 }
 0x4d0   :  { %1247 = vadd.xlane.f32.xlu0 %v1246_v63 }
 0x55c   :  { %v1251_v3 = vpop.xlane.xlu1 %1250 }
 0x55d   :  { %v1248_v2 = vpop.xlane.xlu0 %1247 }
 0x55e   :  { %2565 = vrcp.f32 %v1248_v2  ;;  %v1756_v2 = vld [vmem:[#allocation8] sm:$0xff] }
 0x55f   :  { %2567 = vrcp.f32 %v1251_v3  ;;  %v1757_v3 = vld [vmem:[#allocation8 + $0x8] sm:$0xff] }
 0x568   :  { %v2566_v4 = vpop.eup %2565 }
 0x569   :  { %v1254_v7 = vmul.f32 %v2566_v4, %v2564_v61  ;;  %v2568_v17 = vpop.eup %2567  ;;  %v2488_v4 = vpack.c.bf16 %v1757_v3, %v1756_v2 }
 0x56a   :  { %v1255_v20 = vmul.f32 %v2568_v17, %v2562_v60 }
 0x56b   :  { %2291 = vmatprep.mubr.msk.f32.mxu1 %vm513_vm2, %v1254_v7  ;;  %v1758_v7 = vld [vmem:[#allocation8 + $0x10] sm:$0xff]  ;;  %2489 = vmatprep.subr.bf16.mxu0 %v2488_v4 }
 0x56c   :  { %2491 = vmatpush3.bf16.msra.mxu0 %v2488_v4 }
 0x56e   :  { %v2279_v9 = vpop.f32.mrb[12].mxu1 }
 0x56f   :  { %v1150_v10 = vadd.f32 %v2279_v9, %v2031_v8  ;;  %v1144_v11 = vpop.f32.mrb[13].mxu1 }
 0x570   :  { %v1145_v14 = vadd.f32 %v2031_v8, %v1144_v11  ;;  %v1759_v8 = vld [vmem:[#allocation8 + $0x18] sm:$0xff]  ;;  %v1867_v11 = vld [vmem:[%s3216_s15 + $0x8] sm:$0xff] }
 0x571   :  { %v2492_v9 = vpack.c.bf16 %v1759_v8, %v1758_v7 }
 0x572   :  { %v2458_v15 = vpack.c.bf16 %v1150_v10, %v1145_v14  ;;  %v1866_v10 = vld [vmem:[%s3216_s15] sm:$0xff] }
 0x573   :  { %2493 = vmatprep.subr.bf16.mxu0 %v2492_v9  ;;  %v2496_v12 = vpack.c.bf16 %v1867_v11, %v1866_v10  ;;  %v2064_v11 = vld [vmem:[%s3230_s2] ss:$0 sm:$0xff] }
 0x574   :  { %2459 = vmatprep.subr.bf16.mxu1 %v2458_v15  ;;  %2495 = vmatpush3.bf16.msra.mxu0 %v2492_v9 }
 0x575   :  { %2461 = vmatpush3.bf16.msra.mxu1 %v2458_v15  ;;  %2497 = vmatprep.subr.bf16.mxu0 %v2496_v12 }
 0x576   :  { %2463 = vmatprep.subr.bf16.mxu1 %v2462_v16 }
 0x578   :  { %2292 = vmatmul.mubr.msk.f32.vlgmr.msra.gmra.mrb[10].mxu1 %vm513_vm2, %v1255_v20  ;;  %v2059_v20 = vld [vmem:[%s3212_s11] ss:$0 sm:$0xff] }
 0x579   :  { %2465 = vmatpush3.bf16.msra.mxu1 %v2462_v16  ;;  %2302 = vmatprep.mubr.msk.f32.mxu1 %vm118_vm0, %v2922_v41 }
 0x57a   :  { %2467 = vmatprep.subr.bf16.mxu1 %v2466_v21 }
 0x57d   :  { %2469 = vmatpush3.bf16.msra.mxu1 %v2466_v21 }
 0x57e   :  { %2480 = vmatprep.subr.msk.bf16.mxu1 %vm2962_vm1, %v2966_v6 }
 0x580   :  { %2303 = vmatmul.mubr.msk.f32.vlgmr.msra.gmra.mrb[14].mxu1 %vm118_vm0, %v2934_v46 }
 0x586   :  { %2483 = vmatpush3.bf16.xpose.msk.msra.mxu1 %vm2962_vm1, %v2966_v6 }
 0x587   :  { %2485 = vmatprep.subr.bf16.mxu1 %v3048_v34 }
 0x653   :  { %v2304_v41 = vpop.f32.mrb[14].mxu1 }
 0x654   :  { %v1418_v23 = vpop.f32.mrb[15].mxu1  ;;  %v1424_v25 = vadd.f32 %v2304_v41, %v2045_v22 }
 0x655   :  { %v1419_v24 = vadd.f32 %v2045_v22, %v1418_v23  ;;  %v2060_v23 = vld [vmem:[%s3213_s12] ss:$0 sm:$0xff]  ;;  %s2709_s12 = smov [#allocation10]  }
 0x656   :  { %s1973_s3 = sshll.u32 %s2709_s12, 4  ;;  %s1974_s3 = int_to_ptr.vmem [resolvable:$true] %s1973_s3 }
 0x657   :  { %2320 = vmatprep.mubr.msk.f32.mxu1 %vm118_vm0, %v1419_v24  ;;  %s2673_s28 = scalar_lea.vmem %s1974_s3, 256  ;;  %p2678_p5 = scmp.lt.s32.totalorder %s1974_s3, %s1974_s3 }
 0x658   :  { %2321 = vmatmul.mubr.msk.f32.vlgmr.msra.gmra.mrb[16].mxu1 %vm118_vm0, %v1424_v25  ;;  %p2674_p4 = scmp.ne.s32.totalorder %s1974_s3, %s2673_s28  ;;  %p2679_p6 = scmp.lt.s32.totalorder %s2673_s28, %s2673_s28 }
 0x659   :  { %2487 = vmatpush3.bf16.msra.mxu1 %v3048_v34 }
 0x65a   :  { %p2680_p7 = por %p2679_p6, %p2678_p5 }
 0x65c   :  { %p2681_p8 = pnand %p2680_p7, %p2674_p4 }
 0x72b   :  { %v2322_v46 = vpop.f32.mrb[16].mxu1 }
 0x72c   :  { %v1593_v5 = vadd.f32 %v2322_v46, %v3012_v30  ;;  %v1587_v6 = vpop.f32.mrb[17].mxu1 }
 0x72d   :  { %v1588_v27 = vadd.f32 %v1587_v6, %v3014_v31  ;;  %v1868_v6 = vld [vmem:[%s3216_s15 + $0x10] sm:$0xff] }
 0x72e   :  { %v1599_v28 = vsel %vm513_vm2, %v1593_v5, -inf }
 0x72f   :  { %1600 = vmax.xlane.f32.xlu1 %v1599_v28  ;;  %v1596_v29 = vsel %vm513_vm2, %v1588_v27, -inf }
 0x730   :  { %1597 = vmax.xlane.f32.xlu0 %v1596_v29  ;;  %v1870_v29 = vld [vmem:[%s3216_s15 + $0x20] sm:$0xff] }
 0x7bc   :  { %v1601_v32 = vpop.xlane.xlu1 %1600 }
 0x7bd   :  { %v1603_v33 = vsub.f32 %v1593_v5, %v1601_v32  ;;  %v1598_v35 = vpop.xlane.xlu0 %1597  ;;  %v1871_v32 = vld [vmem:[%s3216_s15 + $0x28] sm:$0xff] }
 0x7be   :  { %v1602_v36 = vsub.f32 %v1588_v27, %v1598_v35  ;;  %v1869_v27 = vld [vmem:[%s3216_s15 + $0x18] sm:$0xff]  ;;  %v1872_v35 = vld [vmem:[%s3216_s15 + $0x30] sm:$0xff] }
 0x7bf   :  { %v1606_v37 = vmul.f32 1.442695, %v1603_v33  ;;  %v2500_v28 = vpack.c.bf16 %v1869_v27, %v1868_v6  ;;  %v2504_v33 = vpack.c.bf16 %v1871_v32, %v1870_v29 }
 0x7c0   :  { %v1604_v38 = vmul.f32 1.442695, %v1602_v36  ;;  %v1873_v36 = vld [vmem:[%s3216_s15 + $0x38] sm:$0xff] }
 0x7c1   :  { %2569 = vpow2.f32 %v1606_v37  ;;  %v2508_v37 = vpack.c.bf16 %v1873_v36, %v1872_v35 }
 0x7c2   :  { %2571 = vpow2.f32 %v1604_v38  ;;  %v1874_v38 = vld [vmem:[%s3216_s15 + $0x40] sm:$0xff] }
 0x7cb   :  { %v2570_v34 = vpop.eup %2569 }
 0x7cc   :  { %v2572_v39 = vpop.eup %2571  ;;  %v1611_v30 = vsel %vm513_vm2, %v2570_v34, 0.0 }
 0x7cd   :  { %1612 = vadd.xlane.f32.xlu1 %v1611_v30  ;;  %v1608_v31 = vsel %vm513_vm2, %v2572_v39, 0.0  ;;  %v1876_v30 = vld [vmem:[%s3216_s15 + $0x50] sm:$0xff] }
 0x7ce   :  { %1609 = vadd.xlane.f32.xlu0 %v1608_v31  ;;  %v1877_v31 = vld [vmem:[%s3216_s15 + $0x58] sm:$0xff] }
 0x85a   :  { %v1613_v40 = vpop.xlane.xlu1 %1612 }
 0x85b   :  { %2573 = vrcp.f32 %v1613_v40  ;;  %v1610_v42 = vpop.xlane.xlu0 %1609  ;;  %v2516_v40 = vpack.c.bf16 %v1877_v31, %v1876_v30 }
 0x85c   :  { %2575 = vrcp.f32 %v1610_v42  ;;  %v1878_v42 = vld [vmem:[%s3216_s15 + $0x60] sm:$0xff] }
 0x865   :  { %v2574_v43 = vpop.eup %2573 }
 0x866   :  { %v2576_v44 = vpop.eup %2575  ;;  %v1617_v47 = vmul.f32 %v2574_v43, %v2570_v34  ;;  %v1875_v34 = vld [vmem:[%s3216_s15 + $0x48] sm:$0xff] }
 0x867   :  { %v1616_v45 = vmul.f32 %v2576_v44, %v2572_v39  ;;  %v2512_v39 = vpack.c.bf16 %v1875_v34, %v1874_v38  ;;  %v1879_v43 = vld [vmem:[%s3216_s15 + $0x68] sm:$0xff] }
 0x868   :  { %v2520_v44 = vpack.c.bf16 %v1879_v43, %v1878_v42 }
 0x869   :  { %2327 = vmatprep.mubr.msk.f32.mxu1 %vm513_vm2, %v1616_v45  ;;  %v1880_v45 = vld [vmem:[%s3216_s15 + $0x70] sm:$0xff] }
 0x86a   :  { %2328 = vmatmul.mubr.msk.f32.vlgmr.msra.gmra.mrb[10].mxu1 %vm513_vm2, %v1617_v47  ;;  %v1881_v47 = vld [vmem:[%s3216_s15 + $0x78] sm:$0xff] }
 0x93d   :  { %v2329_v48 = vpop.f32.mrb[10].mxu1 }
 0x93e   :  { %v1702_v50 = vadd.f32 %v2329_v48, %v2876_v1  ;;  %v1690_v51 = vpop.f32.mrb[11].mxu1  ;;  %v2524_v48 = vpack.c.bf16 %v1881_v47, %v1880_v45 }
 0x93f   :  { %v1701_v52 = vadd.f32 %v1690_v51, %v2874_v0 }
 0x940   :  { %v3108_v53 = vadd.f32 %v2058_v49, %v1702_v50 }
 0x941   :  { %v3110_v54 = vadd.f32 %v2058_v49, %v1701_v52  ;;  %v2061_v49 = vld [vmem:[%s3215_s14] ss:$0 sm:$0xff] }
 0x942   :  { %v1717_v26 = vsel %vm118_vm0, %v3108_v53, 0.0 }
 0x943   :  { %1718 = vadd.xlane.f32.xlu1 %v1717_v26  ;;  %v1714_v55 = vsel %vm118_vm0, %v3110_v54, 0.0 }
 0x944   :  { %1715 = vadd.xlane.f32.xlu0 %v1714_v55 }
 0x9d0   :  { %v1719_v56 = vpop.xlane.xlu1 %1718 }
 0x9d1   :  { %v1721_v57 = vmul.f32 0.03125, %v1719_v56  ;;  %v1716_v58 = vpop.xlane.xlu0 %1715 }
 0x9d2   :  { %v1720_v59 = vmul.f32 0.03125, %v1716_v58 }
 0x9d3   :  { %v1723_v1 = vsub.f32 %v3108_v53, %v1721_v57 }
 0x9d4   :  { %v1722_v0 = vsub.f32 %v3110_v54, %v1720_v59 }
 0x9d5   :  { %v1725_v60 = vmul.f32 %v1723_v1, %v1723_v1 }
 0x9d6   :  { %v1724_v61 = vmul.f32 %v1722_v0, %v1722_v0 }
 0x9d7   :  { %v1729_v62 = vsel %vm118_vm0, %v1725_v60, 0.0 }
 0x9d8   :  { %1730 = vadd.xlane.f32.xlu1 %v1729_v62  ;;  %v1726_v63 = vsel %vm118_vm0, %v1724_v61, 0.0 }
 0x9d9   :  { %1727 = vadd.xlane.f32.xlu0 %v1726_v63 }
 0xa65   :  { %v1731_v13 = vpop.xlane.xlu1 %1730 }
 0xa66   :  { %v1733_v14 = vmul.f32 0.03125, %v1731_v13  ;;  %v1728_v15 = vpop.xlane.xlu0 %1727 }
 0xa67   :  { %v1732_v16 = vmul.f32 0.03125, %v1728_v15 }
 0xa68   :  { %v1735_v17 = vadd.f32 1e-05, %v1733_v14 }
 0xa69   :  { %v1734_v18 = vadd.f32 1e-05, %v1732_v16 }
 0xa6a   :  { %2577 = vrsqrt.f32 %v1735_v17 }
 0xa6b   :  { %2579 = vrsqrt.f32 %v1734_v18 }
 0xa74   :  { %v2578_v19 = vpop.eup %2577 }
 0xa75   :  { %v2580_v21 = vpop.eup %2579  ;;  %v1739_v22 = vmul.f32 %v2578_v19, %v1723_v1 }
 0xa76   :  { %v1738_v41 = vmul.f32 %v2580_v21, %v1722_v0 }
 0xa77   :  { %v1747_v24 = vmul.f32 %v2059_v20, %v1739_v22 }
 0xa78   :  { %v1746_v25 = vmul.f32 %v2059_v20, %v1738_v41 }
 0xa79   :  { %v1755_v5 = vadd.f32 %v2060_v23, %v1747_v24 }
 0xa7a   :  { %v1754_v46 = vadd.f32 %v2060_v23, %v1746_v25 }
 0xa7c   :  { %2338 = vmatprep.mubr.msk.f32.mxu0 %vm118_vm0, %v1754_v46 }
 0xa7d   :  { %2339 = vmatmul.mubr.msk.f32.vlgmr.msra.gmra.mrb[10].mxu0 %vm118_vm0, %v1755_v5 }
 0xa7e   :  { %2499 = vmatpush3.bf16.msra.mxu0 %v2496_v12 }
 0xa7f   :  { %2501 = vmatprep.subr.bf16.mxu0 %v2500_v28 }
 0xa82   :  { %2503 = vmatpush3.bf16.msra.mxu0 %v2500_v28 }
 0xa83   :  { %2505 = vmatprep.subr.bf16.mxu0 %v2504_v33 }
 0xa86   :  { %2507 = vmatpush3.bf16.msra.mxu0 %v2504_v33 }
 0xa87   :  { %2509 = vmatprep.subr.bf16.mxu0 %v2508_v37 }
 0xa8a   :  { %2511 = vmatpush3.bf16.msra.mxu0 %v2508_v37 }
 0xa8b   :  { %2513 = vmatprep.subr.bf16.mxu0 %v2512_v39 }
 0xa8e   :  { %2515 = vmatpush3.bf16.msra.mxu0 %v2512_v39 }
 0xa8f   :  { %2517 = vmatprep.subr.bf16.mxu0 %v2516_v40 }
 0xa92   :  { %2519 = vmatpush3.bf16.msra.mxu0 %v2516_v40 }
 0xa93   :  { %2521 = vmatprep.subr.bf16.mxu0 %v2520_v44 }
 0xa96   :  { %2523 = vmatpush3.bf16.msra.mxu0 %v2520_v44 }
 0xa97   :  { %2525 = vmatprep.subr.bf16.mxu0 %v2524_v48 }
 0xa9a   :  { %2527 = vmatpush3.bf16.msra.mxu0 %v2524_v48 }
 0xb50   :  { %v2340_v50 = vpop.f32.mrb[10].mxu0 }
 0xb51   :  { %v1845_v51 = vadd.f32 %v2340_v50, %v2061_v49  ;;  %v1839_v52 = vpop.f32.mrb[11].mxu0 }
 0xb52   :  { %v1840_v26 = vadd.f32 %v2061_v49, %v1839_v52 }
 0xb53   :  { %v1851_v55 = vmul.f32 0.044715, %v1845_v51  ;;  %v1849_v8 = vmul.f32 0.5, %v1845_v51 }
 0xb54   :  { %v1850_v56 = vmul.f32 0.044715, %v1840_v26  ;;  %v1848_v4 = vmul.f32 0.5, %v1840_v26 }
 0xb55   :  { %v1853_v57 = vmul.f32 %v1851_v55, %v1845_v51 }
 0xb56   :  { %v1852_v58 = vmul.f32 %v1850_v56, %v1840_v26 }
 0xb57   :  { %v1855_v59 = vmul.f32 %v1853_v57, %v1845_v51 }
 0xb58   :  { %v1854_v1 = vmul.f32 %v1852_v58, %v1840_v26 }
 0xb59   :  { %v1857_v0 = vadd.f32 %v1855_v59, %v1845_v51 }
 0xb5a   :  { %v1856_v60 = vadd.f32 %v1854_v1, %v1840_v26 }
 0xb5b   :  { %v1859_v61 = vmul.f32 0.7978846, %v1857_v0 }
 0xb5c   :  { %v1858_v62 = vmul.f32 0.7978846, %v1856_v60 }
 0xb5d   :  { %2581 = vtanh.f32 %v1859_v61 }
 0xb5e   :  { %2583 = vtanh.f32 %v1858_v62 }
 0xb67   :  { %v2582_v63 = vpop.eup %2581 }
 0xb68   :  { %v2584_v2 = vpop.eup %2583  ;;  %v1863_v3 = vadd.f32 1.0, %v2582_v63 }
 0xb69   :  { %v1862_v7 = vadd.f32 1.0, %v2584_v2 }
 0xb6a   :  { %v1865_v10 = vmul.f32 %v1863_v3, %v1849_v8 }
 0xb6b   :  { %v1864_v9 = vmul.f32 %v1862_v7, %v1848_v4 }
 0xb6d   :  { %2373 = vmatprep.mubr.f32.mxu0 %v1864_v9 }
 0xb6e   :  { %2374 = vmatmul.mubr.f32.vlgmr.msra.gmra.mrb[12].mxu0 %v1865_v10 }
 0xc41   :  { %v2375_v12 = vpop.f32.mrb[12].mxu0 }
 0xc42   :  { %v1961_v13 = vadd.f32 %v2375_v12, %v2064_v11  ;;  %v1955_v14 = vpop.f32.mrb[13].mxu0 }
 0xc43   :  { %v1956_v15 = vadd.f32 %v2064_v11, %v1955_v14 }
 0xc44   :  { %v1965_v16 = vadd.f32 %v1961_v13, %v3108_v53 }
 0xc45   :  { %v1964_v17 = vadd.f32 %v1956_v15, %v3110_v54 }
 0xc46   :  { %1967 = vst.msk [vmem:[#allocation10 + $0x8] sm:$0xff] %vm118_vm0, %v1965_v16 }
 0xc47   :  { %1966 = vst.msk [vmem:[#allocation10] sm:$0xff] %vm118_vm0, %v1964_v17 }
 0xc48   :  { %2684 = shalt.err (!%p2681_p8)
}
 0xc49   :  { %s3231_s19 = sld [smem:[#allocation18_spill]] }
 0xc4f   :  { %s2685_s1 = scalar_lea.hbm %s3231_s19, 256 }
 0xc50   :  { %p2686_p9 = scmp.ne.s32.totalorder %s3231_s19, %s2685_s1  ;;  %p2689_p10 = scmp.lt.u32.totalorder %s2685_s1, %s3231_s19 }
 0xc52   :  { %p2691_p11 = pnand %p2689_p10, %p2686_p9 }
 0xc54   :  { %2694 = shalt.err (!%p2691_p11)
}
 0xc55   :  { %1979 = dma.vmem_to_hbm [thread:$0]  %s1974_s3, 256, %s3231_s19, [#allocation4], %s2705_s22, %s2705_s22, %s2706_s23  }
 0xc56   :  { %2701 = dma.done.wait [#allocation4], 256  }
 0xc57   :  { %2702 = vsyncadd [#allocation4], 4294967040 }
 0xc58   :  { %1983 = vsyncpa [#allocation3], 1 }
 0xc59   :  { %1984 = vsyncpa [#allocation6], 1 }
 0xc5a   :  { %1985 = vsyncpa [#allocation9], 1 }
 0xc5b   :  { %1986 = vsyncpa [#allocation4], 1 }

</bundles_post_ra>
